<compile_context>
chip_gen: v6e
topology: v6e:2x2x1
jax: 0.10.0
libtpu: 0.0.40
codegen_flags: <defaults>
</compile_context>

<pallas_src>
import jax
import jax.numpy as jnp
from jax.experimental import pallas as pl
from jax.experimental.pallas import tpu as pltpu


# --------------------------------------------------------------------------
# helpers
# --------------------------------------------------------------------------
def _round_up(n, m):
    return ((n + m - 1) // m) * m


def _pad2(w, rows, cols):
    return jnp.pad(w, ((0, rows - w.shape[0]), (0, cols - w.shape[1])))


def _choose_tile(T_pad):
    """T_pad is a multiple of 128.  Prefer the largest tile that still leaves
    >= 2 grid steps on the token axis (double-buffering / dual-TC splitting);
    fall back to a single 128-wide tile only when T_pad == 128."""
    for tq in (2048, 1024, 512, 256, 128):
        if T_pad % tq == 0 and T_pad // tq >= 2:
            return tq
    return 128


# --------------------------------------------------------------------------
# Pallas kernel: fused conditioned block for one (virtual-batch, token-tile) cell.
# All activations live in the transposed [channel, token] layout:
#   h0   = gelu(W_in^T [x ; ic] + cond)                       [D_pad, TQ]
#   q    = Wq^T h0                    (1/sqrt(D) folded into Wq at init)
#   attn = softmax_over_keys(K q + bias)                      [S_pad, TQ]
#   ctx  = V^T attn                                           [D_pad, TQ]
#   out  = W_out^T h0 + (W_out^T Wo^T) ctx + b_out            [C, TQ]
# K and V^T are precomputed per (virtual) batch in the wrapper.
# --------------------------------------------------------------------------
def _cond_block_kernel(xc_ref, cond_ref, k_ref, vt_ref, bias_ref,
                       w_in_t_ref, wq_t_ref, w_out_t_ref, w_fused_ref,
                       b_out_ref, out_ref):
    f32 = jnp.float32
    bf16 = jnp.bfloat16

    # ---- fused input projection (x ++ input_concat_cond as a single K=C+C_ic dot) ----
    h0 = jnp.dot(w_in_t_ref[...], xc_ref[...], preferred_element_type=f32)
    h0 = h0 + cond_ref[...]                       # timestep emb + global embed + b_in
    # TODO(synk): tanh-approx GELU; PyTorch nn.GELU defaults to the exact erf form.
    h0 = jax.nn.gelu(h0, approximate=True)        # [D_pad, TQ] f32
    h0_bf = h0.astype(bf16)

    # ---- single-head cross-attention; K / V^T precomputed per batch in the wrapper ----
    q = jnp.dot(wq_t_ref[...], h0_bf, preferred_element_type=f32)       # [D_pad, TQ]
    scores = jnp.dot(k_ref[...], q.astype(bf16),
                     preferred_element_type=f32)                        # [S_pad, TQ]
    scores = scores + bias_ref[...]               # masked / padded keys -> -1e9

    m = jnp.max(scores, axis=0, keepdims=True)                          # [1, TQ]
    p = jnp.exp(scores - m)
    denom = jnp.sum(p, axis=0, keepdims=True)                           # [1, TQ]
    attn = p * pl.reciprocal(denom, approx=True)

    ctx = jnp.dot(vt_ref[...], attn.astype(bf16),
                  preferred_element_type=f32)                           # [D_pad, TQ]

    # ---- fused output projection: W_out^T(h0 + Wo^T ctx) = W_out^T h0 + w_fused ctx ----
    out = jnp.dot(w_out_t_ref[...], h0_bf, preferred_element_type=f32)
    out = out + jnp.dot(w_fused_ref[...], ctx.astype(bf16),
                        preferred_element_type=f32)                     # [C, TQ]
    out_ref[...] = (out + b_out_ref[...]).astype(out_ref.dtype)


def _cond_block_call(params, xc, cond_col, k_b, vt_b, bias_col, Bv):
    """xc: physical batch B, NCL [B, C+C_ic, T_pad] (bf16, T_pad % 128 == 0);
    conditioning tensors carry virtual batch Bv (B, or 2B for batch_cfg).
    Returns [Bv, C, T_pad] f32 in NCL layout."""
    B, Cin, T_pad = xc.shape
    C = params["C"]
    Dp, Sp = params["D_pad"], params["S_pad"]
    TQ = _choose_tile(T_pad)

    if Bv == B:
        x_map = lambda b, q: (b, 0, q)
    else:
        # CFG batching: alias the same x / input_concat blocks for the uncond half
        # instead of physically duplicating them in HBM.
        x_map = lambda b, q: (b % B, 0, q)

    cond_map = lambda b, q: (b, 0, 0)
    # TODO(synk): constant-index weight specs could use pipeline_mode=pl.Buffered(1)
    # to drop the redundant second buffer (~100 KiB); omitted for lowering safety.
    const2 = lambda shape: pl.BlockSpec(shape, lambda b, q: (0, 0))

    grid_spec = pltpu.PrefetchScalarGridSpec(
        num_scalar_prefetch=0,
        grid=(Bv, T_pad // TQ),
        in_specs=[
            pl.BlockSpec((None, Cin, TQ), x_map),       # x ++ input_concat_cond (NCL)
            pl.BlockSpec((None, Dp, 1), cond_map),      # conditioning column
            pl.BlockSpec((None, Sp, Dp), cond_map),     # K   (precomputed per batch)
            pl.BlockSpec((None, Dp, Sp), cond_map),     # V^T (precomputed per batch)
            pl.BlockSpec((None, Sp, 1), cond_map),      # additive attention bias
            const2((Dp, Cin)),                          # W_in^T  (x & ic merged)
            const2((Dp, Dp)),                           # Wq^T (1/sqrt(D) folded)
            const2((C, Dp)),                            # W_out^T
            const2((C, Dp)),                            # W_out^T @ Wo^T (fused)
            const2((C, 1)),                             # b_out column
        ],
        out_specs=pl.BlockSpec((None, C, TQ), lambda b, q: (b, 0, q)),
    )

    return pl.pallas_call(
        _cond_block_kernel,
        out_shape=jax.ShapeDtypeStruct((Bv, C, T_pad), jnp.float32),
        grid_spec=grid_spec,
        compiler_params=pltpu.CompilerParams(
            dimension_semantics=("parallel", "parallel"),
            vmem_limit_bytes=32 * 1024 * 1024),   # v7x-safe (64 MiB per-core VMEM)
    )(xc, cond_col, k_b, vt_b, bias_col,
      params["w_in_t"], params["wq_t"], params["w_out_t"], params["w_fused"],
      params["b_out_col"])


# --------------------------------------------------------------------------
# Glue: timestep embedding, conditioning assembly, CFG (interface of the
# PyTorch ConditionedDiffusionModel.forward signature).
# --------------------------------------------------------------------------
def _timestep_embedding(t, params):
    # t: [Bv] float in [0, 1] -> [Bv, D]
    ang = 2.0 * jnp.pi * t[:, None] * params["t_freqs"][None, :]
    emb = jnp.concatenate([jnp.sin(ang), jnp.cos(ang)], axis=-1)
    h = jax.nn.silu(emb @ params["t_w1"] + params["t_b1"])
    return h @ params["t_w2"] + params["t_b2"]


def _forward_impl(params, x, input_concat_cond, t,
                  cross_attn_cond, cross_attn_mask, global_embed):
    """x: [B, C, T] (NCL); conditioning tensors carry virtual batch Bv = t.shape[0]
    (Bv == B, or 2B when CFG is batched).  Returns [Bv, C, T]."""
    B, C, T = x.shape
    Bv = t.shape[0]
    D, S, Dc = params["D"], params["S"], params["Dc"]
    Dp, Sp, Dcp = params["D_pad"], params["S_pad"], params["Dc_pad"]
    C_ic = params["C_ic"]

    # Conditioning embedding (timestep + global): tiny -> plain JAX glue.
    cond = _timestep_embedding(t, params)                               # [Bv, D]
    if global_embed is not None:
        cond = cond + global_embed @ params["wg"]
    cond = jnp.pad(cond, ((0, 0), (0, Dp - D))) + params["b_in_row"][None, :]
    cond_col = cond[:, :, None].astype(jnp.float32)                     # [Bv, D_pad, 1]

    # Cross-attention K / V^T precomputed ONCE per virtual batch (hoisted out of the
    # per-token-tile kernel), padded + bf16.
    if cross_attn_cond is None:
        cross_attn_cond = jnp.zeros((Bv, S, Dc), jnp.float32)
    if cross_attn_mask is None:
        cross_attn_mask = jnp.ones((Bv, S), jnp.float32)
    ca = jnp.pad(cross_attn_cond.astype(jnp.bfloat16),
                 ((0, 0), (0, Sp - S), (0, Dcp - Dc)))                  # [Bv, S_pad, Dc_pad]
    k_b = jnp.einsum("bse,ed->bsd", ca, params["wk"],
                     preferred_element_type=jnp.float32).astype(jnp.bfloat16)
    vt_b = jnp.einsum("de,bse->bds", params["wv_t"], ca,
                      preferred_element_type=jnp.float32).astype(jnp.bfloat16)
    # TODO(synk): an all-zero cross_attn_mask yields a uniform softmax over masked keys
    # instead of a zero context vector (edge case not guarded).
    bias = (cross_attn_mask.astype(jnp.float32) - 1.0) * 1e9            # additive mask
    bias = jnp.pad(bias, ((0, 0), (0, Sp - S)), constant_values=-1e9)   # mask padded keys
    bias_col = bias[:, :, None]                                         # [Bv, S_pad, 1]

    # x ++ input_concat_cond stacked on the channel axis; token dim zero-padded to a
    # multiple of 128 so every output tile stays lane-dense (no masked partial stores).
    if input_concat_cond is None:
        input_concat_cond = jnp.zeros((B, C_ic, T), x.dtype)
    xc = jnp.concatenate([x, input_concat_cond], axis=1).astype(jnp.bfloat16)
    T_pad = max(_round_up(T, 128), 128)
    if T_pad != T:
        xc = jnp.pad(xc, ((0, 0), (0, 0), (0, T_pad - T)))

    out = _cond_block_call(params, xc, cond_col, k_b, vt_b, bias_col, Bv)
    return out[:, :, :T]


def conditioned_diffusion_forward(params, x, t,
                                  cross_attn_cond=None, cross_attn_mask=None,
                                  input_concat_cond=None, global_embed=None,
                                  prepend_cond=None, prepend_cond_mask=None,
                                  cfg_scale=1.0, cfg_dropout_prob=0.0,
                                  batch_cfg=False, rescale_cfg=False):
    # TODO(synk): cfg_dropout_prob is a stochastic training-time conditioning dropout;
    #             not applied here (inference-style forward).
    # TODO(synk): prepend_cond / prepend_cond_mask are not consumed by this synthetic
    #             concrete model (the abstract base class only declares support flags).
    del prepend_cond, prepend_cond_mask, cfg_dropout_prob

    if cfg_scale == 1.0:
        return _forward_impl(params, x, input_concat_cond, t,
                             cross_attn_cond, cross_attn_mask, global_embed)

    B = x.shape[0]
    if batch_cfg:
        # Cond + uncond in one kernel launch; x / input_concat_cond are NOT duplicated
        # in HBM (the kernel aliases them via index_map b % B).
        S, Dc, Dg = params["S"], params["Dc"], params["Dg"]
        ca = cross_attn_cond if cross_attn_cond is not None else jnp.zeros((B, S, Dc), jnp.float32)
        cm = cross_attn_mask if cross_attn_mask is not None else jnp.ones((B, S), jnp.float32)
        ge = global_embed if global_embed is not None else jnp.zeros((B, Dg), jnp.float32)
        t2 = jnp.concatenate([t, t], axis=0)
        ca2 = jnp.concatenate([ca, jnp.zeros_like(ca)], axis=0)
        cm2 = jnp.concatenate([cm, jnp.ones_like(cm)], axis=0)
        ge2 = jnp.concatenate([ge, jnp.zeros_like(ge)], axis=0)
        both = _forward_impl(params, x, input_concat_cond, t2, ca2, cm2, ge2)
        cond_out, uncond_out = both[:B], both[B:]
    else:
        cond_out = _forward_impl(params, x, input_concat_cond, t,
                                 cross_attn_cond, cross_attn_mask, global_embed)
        uncond_out = _forward_impl(params, x, input_concat_cond, t, None, None, None)

    cfg_out = uncond_out + (cond_out - uncond_out) * cfg_scale
    if rescale_cfg:
        cond_std = jnp.std(cond_out, axis=(1, 2), keepdims=True)
        cfg_std = jnp.std(cfg_out, axis=(1, 2), keepdims=True)
        cfg_out = cfg_out * (cond_std / (cfg_std + 1e-8))
    return cfg_out


# --------------------------------------------------------------------------
# Deterministic parameter init: logical (small) dims for the plain-JAX glue,
# kernel-ready weights pre-transposed / merged / zero-padded / bf16.
# --------------------------------------------------------------------------
def init_params(key, C, C_ic, D, Dc, Dg, S, n_freqs=16):
    Dp, Dcp, Sp = _round_up(D, 128), _round_up(Dc, 128), _round_up(S, 128)
    ks = jax.random.split(key, 12)
    n = lambda k, shape, s=0.02: (s * jax.random.normal(k, shape)).astype(jnp.float32)
    bf = jnp.bfloat16

    w_in_x = n(ks[0], (C, D))
    w_in_ic = n(ks[1], (C_ic, D))
    wq = n(ks[2], (D, D)) * (1.0 / float(D) ** 0.5)     # attention 1/sqrt(D) folded in
    wk = n(ks[3], (Dc, D))
    wv = n(ks[4], (Dc, D))
    wo = n(ks[5], (D, D))
    w_out = n(ks[6], (D, C))

    w_in_t = jnp.concatenate([w_in_x.T, w_in_ic.T], axis=1)   # [D, C + C_ic]
    w_fused = w_out.T @ wo.T                                   # [C, D]  (Wo folded into W_out)

    return {
        # metadata
        "C": C, "C_ic": C_ic, "D": D, "Dc": Dc, "Dg": Dg, "S": S,
        "D_pad": Dp, "Dc_pad": Dcp, "S_pad": Sp,
        # timestep embedding (Fourier feats -> MLP -> D); tiny, plain JAX.
        "t_freqs": jnp.exp(jnp.linspace(0.0, 4.0, n_freqs)).astype(jnp.float32),
        "t_w1": n(ks[7], (2 * n_freqs, D)), "t_b1": jnp.zeros((D,), jnp.float32),
        "t_w2": n(ks[8], (D, D)),           "t_b2": jnp.zeros((D,), jnp.float32),
        # global-cond projection
        "wg": n(ks[9], (Dg, D)),
        # wrapper-side K/V projection weights (applied once per virtual batch)
        "wk":   _pad2(wk, Dcp, Dp).astype(bf),
        "wv_t": _pad2(wv.T, Dp, Dcp).astype(bf),
        # kernel-ready weights for the transposed [channel, token] layout.
        "w_in_t":    _pad2(w_in_t, Dp, C + C_ic).astype(bf),
        "wq_t":      _pad2(wq.T, Dp, Dp).astype(bf),
        "w_out_t":   _pad2(w_out.T, C, Dp).astype(bf),
        "w_fused":   _pad2(w_fused, C, Dp).astype(bf),
        "b_in_row":  jnp.zeros((Dp,), jnp.float32),     # folded into the cond column
        "b_out_col": jnp.zeros((C, 1), jnp.float32),
    }


if __name__ == "__main__":
    B, C, T = 2, 4, 16          # x: [B, C, T]  (NCL, audio-latent layout)
    C_ic = 4                    # input_concat_cond channels
    D = 32                      # hidden width (padded to 128 inside)
    S, Dc = 8, 32               # cross-attn cond: [B, S, Dc]
    Dg = 32                     # global embed dim

    root = jax.random.PRNGKey(0)
    k_p, k_x, k_t, k_ca, k_ic, k_ge = jax.random.split(root, 6)

    params = init_params(k_p, C, C_ic, D, Dc, Dg, S)

    x = jax.random.normal(k_x, (B, C, T), jnp.float32)
    t = jax.random.uniform(k_t, (B,), jnp.float32)
    cross_attn_cond = jax.random.normal(k_ca, (B, S, Dc), jnp.float32)
    cross_attn_mask = jnp.ones((B, S), jnp.float32)
    input_concat_cond = jax.random.normal(k_ic, (B, C_ic, T), jnp.float32)
    global_embed = jax.random.normal(k_ge, (B, Dg), jnp.float32)

    # plain conditioned pass
    out = conditioned_diffusion_forward(
        params, x, t,
        cross_attn_cond=cross_attn_cond, cross_attn_mask=cross_attn_mask,
        input_concat_cond=input_concat_cond, global_embed=global_embed,
        cfg_scale=1.0)
    out = jax.block_until_ready(out)
    assert out.shape == (B, C, T) and out.dtype == jnp.float32

    # CFG pass with batched cond/uncond + rescaling (exercises the b % B aliasing path)
    out_cfg = conditioned_diffusion_forward(
        params, x, t,
        cross_attn_cond=cross_attn_cond, cross_attn_mask=cross_attn_mask,
        input_concat_cond=input_concat_cond, global_embed=global_embed,
        cfg_scale=1.5, batch_cfg=True, rescale_cfg=True)
    out_cfg = jax.block_until_ready(out_cfg)
    assert out_cfg.shape == (B, C, T)

    # ragged-T path: token dim not a multiple of 128 (exercises wrapper padding +
    # a multi-tile token grid, so the output stays lane-dense and pipelined)
    T2 = 272
    x2 = jax.random.normal(k_x, (1, C, T2), jnp.float32)
    t2 = jnp.full((1,), 0.3, jnp.float32)
    out2 = conditioned_diffusion_forward(params, x2, t2, cfg_scale=1.0)
    out2 = jax.block_until_ready(out2)
    assert out2.shape == (1, C, T2)

    assert bool(jnp.all(jnp.isfinite(out)))
    assert bool(jnp.all(jnp.isfinite(out_cfg)))
    assert bool(jnp.all(jnp.isfinite(out2)))

    print("KERNEL_OK")
</pallas_src>

<mosaic_0001>
module attributes {stable_mosaic.version = 11 : i64} {
  func.func @_cond_block_kernel(%arg0: i32, %arg1: i32, %arg2: memref<1x8x128xbf16, #tpu.memory_space<vmem>>, %arg3: memref<1x128x1xf32, #tpu.memory_space<vmem>>, %arg4: memref<1x128x128xbf16, #tpu.memory_space<vmem>>, %arg5: memref<1x128x128xbf16, #tpu.memory_space<vmem>>, %arg6: memref<1x128x1xf32, #tpu.memory_space<vmem>>, %arg7: memref<128x8xbf16, #tpu.memory_space<vmem>>, %arg8: memref<128x128xbf16, #tpu.memory_space<vmem>>, %arg9: memref<4x128xbf16, #tpu.memory_space<vmem>>, %arg10: memref<4x128xbf16, #tpu.memory_space<vmem>>, %arg11: memref<4x1xf32, #tpu.memory_space<vmem>>, %arg12: memref<1x4x128xf32, #tpu.memory_space<vmem>>) attributes {dimension_semantics = [#tpu.dimension_semantics<parallel>, #tpu.dimension_semantics<parallel>], iteration_bounds = array<i64: 2, 1>, scalar_prefetch = 0 : i64, scratch_operands = 0 : i64, tpu.core_type = #tpu.core_type<tc>, window_params = [{transform_indices = @transform_0, window_bounds = array<i64: 1, 8, 128>}, {transform_indices = @transform_1, window_bounds = array<i64: 1, 128, 1>}, {transform_indices = @transform_2, window_bounds = array<i64: 1, 128, 128>}, {transform_indices = @transform_3, window_bounds = array<i64: 1, 128, 128>}, {transform_indices = @transform_4, window_bounds = array<i64: 1, 128, 1>}, {pipeline_mode = #tpu.pipeline_mode<synchronous>, transform_indices = @transform_5, window_bounds = array<i64: 128, 8>}, {pipeline_mode = #tpu.pipeline_mode<synchronous>, transform_indices = @transform_6, window_bounds = array<i64: 128, 128>}, {pipeline_mode = #tpu.pipeline_mode<synchronous>, transform_indices = @transform_7, window_bounds = array<i64: 4, 128>}, {pipeline_mode = #tpu.pipeline_mode<synchronous>, transform_indices = @transform_8, window_bounds = array<i64: 4, 128>}, {pipeline_mode = #tpu.pipeline_mode<synchronous>, transform_indices = @transform_9, window_bounds = array<i64: 4, 1>}, {transform_indices = @transform_10, window_bounds = array<i64: 1, 4, 128>}]} {
    %c0 = arith.constant 0 : index
    %c0_0 = arith.constant 0 : index
    %0 = vector.load %arg7[%c0, %c0_0] : memref<128x8xbf16, #tpu.memory_space<vmem>>, vector<128x8xbf16>
    %c0_1 = arith.constant 0 : index
    %c0_2 = arith.constant 0 : index
    %c0_3 = arith.constant 0 : index
    %1 = vector.load %arg2[%c0_1, %c0_2, %c0_3] : memref<1x8x128xbf16, #tpu.memory_space<vmem>>, vector<1x8x128xbf16>
    %2 = vector.shape_cast %1 : vector<1x8x128xbf16> to vector<8x128xbf16>
    %cst = arith.constant dense<0.000000e+00> : vector<128x128xf32>
    %3 = tpu.matmul %0, %2, %cst {dimension_numbers = #tpu.dot_dimension_numbers<[1], [0], [0], [1], [0, 0, 1, 1], [], []>} : vector<128x8xbf16>, vector<8x128xbf16>, vector<128x128xf32> -> vector<128x128xf32>
    %c0_4 = arith.constant 0 : index
    %c0_5 = arith.constant 0 : index
    %c0_6 = arith.constant 0 : index
    %4 = vector.load %arg3[%c0_4, %c0_5, %c0_6] : memref<1x128x1xf32, #tpu.memory_space<vmem>>, vector<1x128x1xf32>
    %5 = vector.shape_cast %4 : vector<1x128x1xf32> to vector<128x1xf32>
    %6 = vector.broadcast %5 : vector<128x1xf32> to vector<128x128xf32>
    %7 = arith.addf %3, %6 : vector<128x128xf32>
    %8 = arith.mulf %7, %7 : vector<128x128xf32>
    %9 = arith.mulf %7, %8 : vector<128x128xf32>
    %cst_7 = arith.constant 4.471500e-02 : f32
    %10 = vector.broadcast %cst_7 : f32 to vector<128x128xf32>
    %11 = arith.mulf %10, %9 : vector<128x128xf32>
    %12 = arith.addf %7, %11 : vector<128x128xf32>
    %cst_8 = arith.constant 0.797884583 : f32
    %13 = vector.broadcast %cst_8 : f32 to vector<128x128xf32>
    %14 = arith.mulf %13, %12 : vector<128x128xf32>
    %15 = math.tanh %14 : vector<128x128xf32>
    %cst_9 = arith.constant 1.000000e+00 : f32
    %16 = vector.broadcast %cst_9 : f32 to vector<128x128xf32>
    %17 = arith.addf %16, %15 : vector<128x128xf32>
    %cst_10 = arith.constant 5.000000e-01 : f32
    %18 = vector.broadcast %cst_10 : f32 to vector<128x128xf32>
    %19 = arith.mulf %18, %17 : vector<128x128xf32>
    %20 = arith.mulf %7, %19 : vector<128x128xf32>
    %21 = arith.truncf %20 : vector<128x128xf32> to vector<128x128xbf16>
    %c0_11 = arith.constant 0 : index
    %c0_12 = arith.constant 0 : index
    %22 = vector.load %arg8[%c0_11, %c0_12] : memref<128x128xbf16, #tpu.memory_space<vmem>>, vector<128x128xbf16>
    %cst_13 = arith.constant dense<0.000000e+00> : vector<128x128xf32>
    %23 = tpu.matmul %22, %21, %cst_13 {dimension_numbers = #tpu.dot_dimension_numbers<[1], [0], [0], [1], [0, 0, 1, 1], [], []>} : vector<128x128xbf16>, vector<128x128xbf16>, vector<128x128xf32> -> vector<128x128xf32>
    %c0_14 = arith.constant 0 : index
    %c0_15 = arith.constant 0 : index
    %c0_16 = arith.constant 0 : index
    %24 = vector.load %arg4[%c0_14, %c0_15, %c0_16] : memref<1x128x128xbf16, #tpu.memory_space<vmem>>, vector<1x128x128xbf16>
    %25 = vector.shape_cast %24 : vector<1x128x128xbf16> to vector<128x128xbf16>
    %26 = arith.truncf %23 : vector<128x128xf32> to vector<128x128xbf16>
    %cst_17 = arith.constant dense<0.000000e+00> : vector<128x128xf32>
    %27 = tpu.matmul %25, %26, %cst_17 {dimension_numbers = #tpu.dot_dimension_numbers<[1], [0], [0], [1], [0, 0, 1, 1], [], []>} : vector<128x128xbf16>, vector<128x128xbf16>, vector<128x128xf32> -> vector<128x128xf32>
    %c0_18 = arith.constant 0 : index
    %c0_19 = arith.constant 0 : index
    %c0_20 = arith.constant 0 : index
    %28 = vector.load %arg6[%c0_18, %c0_19, %c0_20] : memref<1x128x1xf32, #tpu.memory_space<vmem>>, vector<1x128x1xf32>
    %29 = vector.shape_cast %28 : vector<1x128x1xf32> to vector<128x1xf32>
    %30 = vector.broadcast %29 : vector<128x1xf32> to vector<128x128xf32>
    %31 = arith.addf %27, %30 : vector<128x128xf32>
    %cst_21 = arith.constant dense<0xFF800000> : vector<128xf32>
    %32 = vector.multi_reduction <maximumf>, %31, %cst_21 [0] : vector<128x128xf32> to vector<128xf32>
    %33 = vector.shape_cast %32 : vector<128xf32> to vector<1x128xf32>
    %34 = vector.broadcast %33 : vector<1x128xf32> to vector<128x128xf32>
    %35 = arith.subf %31, %34 : vector<128x128xf32>
    %36 = math.exp %35 : vector<128x128xf32>
    %cst_22 = arith.constant dense<0.000000e+00> : vector<128xf32>
    %37 = vector.multi_reduction <add>, %36, %cst_22 [0] : vector<128x128xf32> to vector<128xf32>
    %38 = vector.shape_cast %37 : vector<128xf32> to vector<1x128xf32>
    %39 = tpu.reciprocal %38 {approx = true} : vector<1x128xf32> -> vector<1x128xf32>
    %40 = vector.broadcast %39 : vector<1x128xf32> to vector<128x128xf32>
    %41 = arith.mulf %36, %40 : vector<128x128xf32>
    %c0_23 = arith.constant 0 : index
    %c0_24 = arith.constant 0 : index
    %c0_25 = arith.constant 0 : index
    %42 = vector.load %arg5[%c0_23, %c0_24, %c0_25] : memref<1x128x128xbf16, #tpu.memory_space<vmem>>, vector<1x128x128xbf16>
    %43 = vector.shape_cast %42 : vector<1x128x128xbf16> to vector<128x128xbf16>
    %44 = arith.truncf %41 : vector<128x128xf32> to vector<128x128xbf16>
    %cst_26 = arith.constant dense<0.000000e+00> : vector<128x128xf32>
    %45 = tpu.matmul %43, %44, %cst_26 {dimension_numbers = #tpu.dot_dimension_numbers<[1], [0], [0], [1], [0, 0, 1, 1], [], []>} : vector<128x128xbf16>, vector<128x128xbf16>, vector<128x128xf32> -> vector<128x128xf32>
    %c0_27 = arith.constant 0 : index
    %c0_28 = arith.constant 0 : index
    %46 = vector.load %arg9[%c0_27, %c0_28] : memref<4x128xbf16, #tpu.memory_space<vmem>>, vector<4x128xbf16>
    %cst_29 = arith.constant dense<0.000000e+00> : vector<4x128xf32>
    %47 = tpu.matmul %46, %21, %cst_29 {dimension_numbers = #tpu.dot_dimension_numbers<[1], [0], [0], [1], [0, 0, 1, 1], [], []>} : vector<4x128xbf16>, vector<128x128xbf16>, vector<4x128xf32> -> vector<4x128xf32>
    %c0_30 = arith.constant 0 : index
    %c0_31 = arith.constant 0 : index
    %48 = vector.load %arg10[%c0_30, %c0_31] : memref<4x128xbf16, #tpu.memory_space<vmem>>, vector<4x128xbf16>
    %49 = arith.truncf %45 : vector<128x128xf32> to vector<128x128xbf16>
    %cst_32 = arith.constant dense<0.000000e+00> : vector<4x128xf32>
    %50 = tpu.matmul %48, %49, %cst_32 {dimension_numbers = #tpu.dot_dimension_numbers<[1], [0], [0], [1], [0, 0, 1, 1], [], []>} : vector<4x128xbf16>, vector<128x128xbf16>, vector<4x128xf32> -> vector<4x128xf32>
    %51 = arith.addf %47, %50 : vector<4x128xf32>
    %c0_33 = arith.constant 0 : index
    %c0_34 = arith.constant 0 : index
    %52 = vector.load %arg11[%c0_33, %c0_34] : memref<4x1xf32, #tpu.memory_space<vmem>>, vector<4x1xf32>
    %53 = vector.broadcast %52 : vector<4x1xf32> to vector<4x128xf32>
    %54 = arith.addf %51, %53 : vector<4x128xf32>
    %c0_35 = arith.constant 0 : index
    %c0_36 = arith.constant 0 : index
    %c0_37 = arith.constant 0 : index
    %55 = vector.load %arg12[%c0_35, %c0_36, %c0_37] : memref<1x4x128xf32, #tpu.memory_space<vmem>>, vector<1x4x128xf32>
    %56 = vector.shape_cast %55 : vector<1x4x128xf32> to vector<4x128xf32>
    %57 = vector.shape_cast %54 : vector<4x128xf32> to vector<1x4x128xf32>
    tpu.vector_store %arg12[%c0_35, %c0_36, %c0_37], %57 {strides = array<i32>} : memref<1x4x128xf32, #tpu.memory_space<vmem>>, vector<1x4x128xf32>,
    return
  }
  func.func @transform_0(%arg0: i32, %arg1: i32) -> (i32, i32, i32) {
    %c0_i32 = arith.constant 0 : i32
    %c0_i32_0 = arith.constant 0 : i32
    return %arg0, %c0_i32, %arg1 : i32, i32, i32
  }
  func.func @transform_1(%arg0: i32, %arg1: i32) -> (i32, i32, i32) {
    %c0_i32 = arith.constant 0 : i32
    %c0_i32_0 = arith.constant 0 : i32
    %c0_i32_1 = arith.constant 0 : i32
    return %arg0, %c0_i32, %c0_i32_0 : i32, i32, i32
  }
  func.func @transform_2(%arg0: i32, %arg1: i32) -> (i32, i32, i32) {
    %c0_i32 = arith.constant 0 : i32
    %c0_i32_0 = arith.constant 0 : i32
    %c0_i32_1 = arith.constant 0 : i32
    return %arg0, %c0_i32, %c0_i32_0 : i32, i32, i32
  }
  func.func @transform_3(%arg0: i32, %arg1: i32) -> (i32, i32, i32) {
    %c0_i32 = arith.constant 0 : i32
    %c0_i32_0 = arith.constant 0 : i32
    %c0_i32_1 = arith.constant 0 : i32
    return %arg0, %c0_i32, %c0_i32_0 : i32, i32, i32
  }
  func.func @transform_4(%arg0: i32, %arg1: i32) -> (i32, i32, i32) {
    %c0_i32 = arith.constant 0 : i32
    %c0_i32_0 = arith.constant 0 : i32
    %c0_i32_1 = arith.constant 0 : i32
    return %arg0, %c0_i32, %c0_i32_0 : i32, i32, i32
  }
  func.func @transform_5(%arg0: i32, %arg1: i32) -> (i32, i32) {
    %c0_i32 = arith.constant 0 : i32
    %c0_i32_0 = arith.constant 0 : i32
    %c0_i32_1 = arith.constant 0 : i32
    return %c0_i32, %c0_i32_0 : i32, i32
  }
  func.func @transform_6(%arg0: i32, %arg1: i32) -> (i32, i32) {
    %c0_i32 = arith.constant 0 : i32
    %c0_i32_0 = arith.constant 0 : i32
    %c0_i32_1 = arith.constant 0 : i32
    return %c0_i32, %c0_i32_0 : i32, i32
  }
  func.func @transform_7(%arg0: i32, %arg1: i32) -> (i32, i32) {
    %c0_i32 = arith.constant 0 : i32
    %c0_i32_0 = arith.constant 0 : i32
    %c0_i32_1 = arith.constant 0 : i32
    return %c0_i32, %c0_i32_0 : i32, i32
  }
  func.func @transform_8(%arg0: i32, %arg1: i32) -> (i32, i32) {
    %c0_i32 = arith.constant 0 : i32
    %c0_i32_0 = arith.constant 0 : i32
    %c0_i32_1 = arith.constant 0 : i32
    return %c0_i32, %c0_i32_0 : i32, i32
  }
  func.func @transform_9(%arg0: i32, %arg1: i32) -> (i32, i32) {
    %c0_i32 = arith.constant 0 : i32
    %c0_i32_0 = arith.constant 0 : i32
    %c0_i32_1 = arith.constant 0 : i32
    return %c0_i32, %c0_i32_0 : i32, i32
  }
  func.func @transform_10(%arg0: i32, %arg1: i32) -> (i32, i32, i32) {
    %c0_i32 = arith.constant 0 : i32
    %c0_i32_0 = arith.constant 0 : i32
    return %arg0, %c0_i32, %arg1 : i32, i32, i32
  }
}

</mosaic_0001>

<bundles_post_ra>
// kernel: tpu_custom_call.1
= control target key start
LH: loop header
LB: loop body
LE: loop exit
PB: predicated region body
PF: predicated region fallthrough
CT: control target
= control target key end

     0   :  { %s2890_s0 = inlined_call_operand.vmem [shape: bf16[2,8,128], index: 0, kind: input, shape index: {}]   ;;  %s2891_s1 = inlined_call_operand.vmem [shape: f32[2,128,1], index: 1, kind: input, shape index: {}]   ;;  %s2892_s2 = inlined_call_operand.vmem [shape: bf16[2,128,128], index: 2, kind: input, shape index: {}]   ;;  %s2893_s3 = inlined_call_operand.vmem [shape: bf16[2,128,128], index: 3, kind: input, shape index: {}]   ;;  %s2894_s4 = inlined_call_operand.vmem [shape: f32[2,128,1], index: 4, kind: input, shape index: {}]   ;;  %s2895_s5 = inlined_call_operand.vmem [shape: bf16[128,8], index: 5, kind: input, shape index: {}]   ;;  %s2896_s6 = inlined_call_operand.vmem [shape: bf16[128,128], index: 6, kind: input, shape index: {}]   ;;  %s2897_s7 = inlined_call_operand.vmem [shape: bf16[4,128], index: 7, kind: input, shape index: {}]   ;;  %s2898_s8 = inlined_call_operand.vmem [shape: bf16[4,128], index: 8, kind: input, shape index: {}]   ;;  %s2899_s9 = inlined_call_operand.vmem [shape: f32[4,1], index: 9, kind: input, shape index: {}]   ;;  %s2900_s10 = inlined_call_operand.hbm [shape: f32[2,4,128], index: 10, kind: output, shape index: {}]  }
   0x1   :  { %2902 = sst [smem:[#allocation6_spill]] %s2890_s0 }
   0x2   :  { %2903 = sst [smem:[#allocation7_spill]] %s2891_s1 }
   0x3   :  { %15 = vsyncpa [#allocation3], 0 }
   0x4   :  { %17 = vsyncpa [#allocation3 + $0x1], 0  ;;  %s2414_s13 = smov 0   ;;  %s2416_s14 = smov 0  }
   0x5   :  { %s2418_s15 = smov 0   ;;  %s2420_s16 = smov 0  }
   0x6   :  { %s2422_s17 = smov 0   ;;  %s2424_s18 = smov 0  }
   0x7 LB: > { %s1826_s19 = sadd.s32 4294967295, %s2353_s18   ;;  %s1827_s20 = sadd.s32 4294967294, %s2353_s18   ;;  %s2353_s18 = sphi %s2424_s18, %s23_s18   ;;  %s2349_s17 = sphi %s2422_s17, %s2914_s17   ;;  %s2345_s16 = sphi %s2420_s16, %s2913_s16   ;;  %s2341_s15 = sphi %s2418_s15, %s2912_s15   ;;  %s2337_s14 = sphi %s2416_s14, %s2911_s14   ;;  %s2333_s13 = sphi %s2414_s13, %s2910_s13  }
   0x8   : > { %s35_s21 = sadd.s32 1, %s2349_s17  ;;  %s281_s22 = sadd.s32 1, %s2341_s15 }
   0x9   : > { %p37_p0 = scmp.ge.s32.totalorder %s35_s21, 2  ;;  %p291_p1 = scmp.ne.s32.totalorder %s2341_s15, %s2337_s14 }
   0xa   : > { %p292_p2 = scmp.eq.s32.totalorder %s1826_s19, 1  ;;  %p297_p3 = scmp.ne.s32.totalorder %s2337_s14, %s2333_s13 }
   0xb   : > { %s2916_s21 = smov (%p37_p0, %s35_s21), 0  ;;  %p298_p5 = scmp.eq.s32.totalorder %s1827_s20, 1 }
   0xc   : > { %2904 = sst [smem:[#allocation5_spill]] %s2916_s21  ;;  %p2454_p4 = por %p292_p2, %p291_p1 }
   0xd   : > { %s276_s24 = ssub.s32 %s2349_s17, %s2916_s21  ;;  %p1830_p6 = scmp.ge.s32.totalorder %s2353_s18, 1 }
   0xe   : > { %p279_p7 = scmp.eq.s32.totalorder %s276_s24, 0  ;;  %p2461_p8 = por %p298_p5, %p297_p3 }
   0xf   : > { %p373_p9 = scmp.lt.s32.totalorder %s2353_s18, 3 }
  0x10   : > { %s2467_s26 = scalar_select %p279_p7, %s2341_s15, %s281_s22  }
  0x11   : > { %p374_p10 = pnand %p1830_p6, %p373_p9 }
  0x12   : > { %p433_p11 = scmp.lt.s32.totalorder (!%p374_p10), %s2345_s16, 1  ;;  %s2907_s0 = sld [smem:[#allocation6_spill]] (!%p374_p10) }
  0x13   : > { %377 = sbr.rel (%p374_p10) target bundleno = 1394 (0x572), region = 60  ;;  %s2908_s1 = sld [smem:[#allocation7_spill]] (!%p374_p10) }
  0x14   : > { %s430_s19 = sand.u32 (!%p374_p10), 1, %s2337_s14  }
  0x18   : > { %v2179_v0 = vld [vmem:[%s2895_s5] sm:$0xff]   ;;  %vm614_vm0 = vcmask 64512   ;;  %s2474_s29 = scalar_select %p433_p11, %s2345_s16, 1  ;;  %vm639_vm1 = vcmask 1043456   ;;  %v2355_v1 = vmov 0   ;;  %v2180_v4 = vld [vmem:[%s2895_s5 + $0x8] sm:$0xff]  }
  0x19   : > { %1966 = vmatprep.mubr.msk.bf16.mxu0 %vm614_vm0, %v2179_v0  ;;  %2177 = vset.pattern.permute.xlu0 %v2355_v1  ;;  %v2181_v5 = vld [vmem:[%s2895_s5 + $0x10] sm:$0xff]   ;;  %v2182_v11 = vld [vmem:[%s2895_s5 + $0x18] sm:$0xff]   ;;  %v2183_v13 = vld [vmem:[%s2895_s5 + $0x20] sm:$0xff]   ;;  %vm2357_vm2 = vmmov 0  }
  0x1a   : > { %s1832_s30 = sshll.u32 %s2474_s29, 2  ;;  %s1885_s11 = sshll.u32 %s2474_s29, 7  ;;  %2178 = vset.pattern.permute.xlu1 %v2355_v1  ;;  %v2184_v17 = vld [vmem:[%s2895_s5 + $0x28] sm:$0xff]   ;;  %v2185_v19 = vld [vmem:[%s2895_s5 + $0x30] sm:$0xff]   ;;  %v2186_v23 = vld [vmem:[%s2895_s5 + $0x38] sm:$0xff]  }
  0x1b   : > { %s439_s20 = scalar_lea.vmem %s2907_s0, %s1832_s30  ;;  %s2487_s27 = scalar_lea.vmem %s2908_s1, %s1885_s11  ;;  %v1684_v43 = vld [vmem:[%s2899_s9] sm:$0xf] }
  0x1c   : > { %v477_v2 = vld [vmem:[%s439_s20] sm:$0xf]  ;;  %v492_v6 = vld [vmem:[%s2487_s27 + $0x70] sm:$0xff]  ;;  %v493_v8 = vld [vmem:[%s2487_s27 + $0x78] sm:$0xff]  ;;  %s1886_s24 = sshll.u32 %s2474_s29, 6  ;;  %s2547_s1 = scalar_lea.vmem %s2894_s4, %s1885_s11 }
  0x1d   : > { %2118 = vmatprep.subr.msk.bf16.mxu0 %vm639_vm1, %v477_v2  ;;  %v641_v3 = vsel %vm639_vm1, %v477_v2, 0  ;;  %566 = vperm.xlu0 %2177, %v492_v6   ;;  %v490_v7 = vld [vmem:[%s2487_s27 + $0x60] sm:$0xff]  ;;  %v491_v9 = vld [vmem:[%s2487_s27 + $0x68] sm:$0xff]  ;;  %v488_v10 = vld [vmem:[%s2487_s27 + $0x50] sm:$0xff]  ;;  %s2525_s22 = scalar_lea.vmem %s2892_s2, %s1886_s24  ;;  %s2535_s12 = scalar_lea.vmem %s2893_s3, %s1886_s24 }
  0x1e   : > { %1965 = vmatpush3.bf16.msra.mxu0 %v641_v3  ;;  %556 = vperm.xlu1 %2178, %v490_v7   ;;  %v489_v12 = vld [vmem:[%s2487_s27 + $0x58] sm:$0xff]  ;;  %v486_v14 = vld [vmem:[%s2487_s27 + $0x40] sm:$0xff]  ;;  %v487_v15 = vld [vmem:[%s2487_s27 + $0x48] sm:$0xff]  ;;  %s1831_s20 = sshll.u32 %s430_s19, 2  ;;  %s1882_s0 = sshll.u32 %s2345_s16, 6 }
  0x1f   : > { %v484_v16 = vld [vmem:[%s2487_s27 + $0x30] sm:$0xff]  ;;  %v485_v18 = vld [vmem:[%s2487_s27 + $0x38] sm:$0xff]  ;;  %v482_v20 = vld [vmem:[%s2487_s27 + $0x20] sm:$0xff]  ;;  %s432_s29 = scalar_lea.vmem [#allocation2], %s1831_s20  ;;  %s2844_s24 = scalar_lea.hbm %s2900_s10, %s1882_s0 }
  0x20   : > { %v483_v21 = vld [vmem:[%s2487_s27 + $0x28] sm:$0xff]  ;;  %v480_v22 = vld [vmem:[%s2487_s27 + $0x10] sm:$0xff]  ;;  %v481_v24 = vld [vmem:[%s2487_s27 + $0x18] sm:$0xff]  ;;  %s1707_s11 = sshll.u32 %s432_s29, 4  ;;  %s1693_s16 = scalar_lea.sflag [#allocation3], %s430_s19  ;;  %s2846_s11 = int_to_ptr.vmem [resolvable:$true] %s1707_s11 }
  0x21   : > { %1967 = vmatmul.mubr.msk.bf16.vlgmr.msra.gmra.mxu0 %vm614_vm0, %v2180_v4  ;;  %571 = vperm.xlu0 %2177, %v493_v8   ;;  %v478_v25 = vld [vmem:[%s2487_s27] sm:$0xff]  ;;  %v479_v26 = vld [vmem:[%s2487_s27 + $0x8] sm:$0xff]  ;;  %v1079_v29 = vld [vmem:[%s2547_s1 + $0x10] sm:$0xff]  ;;  %s2277_s28 = scalar_lea.vmem %s2846_s11, 64 }
  0x22   : > { %1970 = vmatprep.mubr.msk.bf16.mxu0 %vm614_vm0, %v2181_v5  ;;  %561 = vperm.xlu1 %2178, %v491_v9   ;;  %v1077_v27 = vld [vmem:[%s2547_s1] sm:$0xff]  ;;  %v1078_v28 = vld [vmem:[%s2547_s1 + $0x8] sm:$0xff]  ;;  %v1080_v30 = vld [vmem:[%s2547_s1 + $0x18] sm:$0xff]  ;;  %p2278_p12 = scmp.ne.s32.totalorder %s2846_s11, %s2277_s28 }
  0x23   : > { %v1081_v31 = vld [vmem:[%s2547_s1 + $0x20] sm:$0xff]  ;;  %v1082_v32 = vld [vmem:[%s2547_s1 + $0x28] sm:$0xff]  ;;  %v1083_v33 = vld [vmem:[%s2547_s1 + $0x30] sm:$0xff] }
  0x24   : > { %v1084_v34 = vld [vmem:[%s2547_s1 + $0x38] sm:$0xff]  ;;  %v1085_v35 = vld [vmem:[%s2547_s1 + $0x40] sm:$0xff]  ;;  %v1086_v36 = vld [vmem:[%s2547_s1 + $0x48] sm:$0xff]  ;;  %p2279_p13 = pnand %p2278_p12, %p2454_p4 }
  0x25   : > { %546 = vperm.xlu0 %2177, %v488_v10   ;;  %v1087_v37 = vld [vmem:[%s2547_s1 + $0x50] sm:$0xff]  ;;  %v1088_v38 = vld [vmem:[%s2547_s1 + $0x58] sm:$0xff]  ;;  %v1089_v39 = vld [vmem:[%s2547_s1 + $0x60] sm:$0xff] }
  0x26   : > { %551 = vperm.xlu1 %2178, %v489_v12   ;;  %v1090_v40 = vld [vmem:[%s2547_s1 + $0x68] sm:$0xff]  ;;  %v1091_v41 = vld [vmem:[%s2547_s1 + $0x70] sm:$0xff]  ;;  %v1092_v42 = vld [vmem:[%s2547_s1 + $0x78] sm:$0xff]  ;;  %p2280_p0 = pneg %p2279_p13 }
  0x27   : > { %v2187_v44 = vld [vmem:[%s2896_s6] sm:$0xff]  }
  0x28   : > { %1998 = vmatprep.mubr.bf16.mxu1 %v2187_v44 }
  0x29   : > { %1971 = vmatmul.mubr.msk.bf16.gmra.mxu0 %vm614_vm0, %v2182_v11  ;;  %536 = vperm.xlu0 %2177, %v486_v14  }
  0x2a   : > { %1974 = vmatprep.mubr.msk.bf16.mxu0 %vm614_vm0, %v2183_v13  ;;  %541 = vperm.xlu1 %2178, %v487_v15  }
  0x2d   : > { %526 = vperm.xlu0 %2177, %v484_v16  }
  0x2e   : > { %531 = vperm.xlu1 %2178, %v485_v18  }
  0x31   : > { %1975 = vmatmul.mubr.msk.bf16.gmra.mxu0 %vm614_vm0, %v2184_v17  ;;  %516 = vperm.xlu0 %2177, %v482_v20  }
  0x32   : > { %1978 = vmatprep.mubr.msk.bf16.mxu0 %vm614_vm0, %v2185_v19  ;;  %521 = vperm.xlu1 %2178, %v483_v21  }
  0x35   : > { %506 = vperm.xlu0 %2177, %v480_v22  }
  0x36   : > { %511 = vperm.xlu1 %2178, %v481_v24  }
  0x39   : > { %1979 = vmatmul.mubr.msk.bf16.gmra.mxu0 %vm614_vm0, %v2186_v23  ;;  %496 = vperm.xlu0 %2177, %v478_v25  }
  0x3a   : > { %501 = vperm.xlu1 %2178, %v479_v26  }
  0x3d   : > { %1095 = vperm.xlu0 %2177, %v1077_v27  }
  0x3e   : > { %1100 = vperm.xlu1 %2178, %v1078_v28  }
  0x41   : > { %1105 = vperm.xlu0 %2177, %v1079_v29  }
  0x42   : > { %1110 = vperm.xlu1 %2178, %v1080_v30  }
  0x45   : > { %1115 = vperm.xlu0 %2177, %v1081_v31  }
  0x46   : > { %1120 = vperm.xlu1 %2178, %v1082_v32  }
  0x49   : > { %1125 = vperm.xlu0 %2177, %v1083_v33  }
  0x4a   : > { %1130 = vperm.xlu1 %2178, %v1084_v34  }
  0x4d   : > { %1135 = vperm.xlu0 %2177, %v1085_v35  }
  0x4e   : > { %1140 = vperm.xlu1 %2178, %v1086_v36  }
  0x51   : > { %1145 = vperm.xlu0 %2177, %v1087_v37  }
  0x52   : > { %1150 = vperm.xlu1 %2178, %v1088_v38  }
  0x55   : > { %1155 = vperm.xlu0 %2177, %v1089_v39  }
  0x56   : > { %1160 = vperm.xlu1 %2178, %v1090_v40  }
  0x59   : > { %1165 = vperm.xlu0 %2177, %v1091_v41  }
  0x5a   : > { %1170 = vperm.xlu1 %2178, %v1092_v42  }
  0x5d   : > { %1687 = vperm.xlu0 %2177, %v1684_v43  }
  0x98   : > { %v567_v45 = vpop.permute.xlu0 %566 }
  0x99   : > { %v557_v46 = vpop.permute.xlu1 %556 }
  0x9c   : > { %v572_v47 = vpop.permute.xlu0 %571 }
  0x9d   : > { %v2573_v48 = vpop.permute.xlu1 %561 }
  0xa0   : > { %v547_v49 = vpop.permute.xlu0 %546 }
  0xa1   : > { %v552_v50 = vpop.permute.xlu1 %551 }
  0xa4   : > { %v537_v51 = vpop.permute.xlu0 %536 }
  0xa5   : > { %v542_v52 = vpop.permute.xlu1 %541 }
  0xa8   : > { %v527_v56 = vpop.permute.xlu0 %526 }
  0xa9   : > { %v532_v57 = vpop.permute.xlu1 %531 }
  0xac   : > { %v517_v61 = vpop.permute.xlu0 %516 }
  0xad   : > { %v522_v62 = vpop.permute.xlu1 %521 }
  0xb0   : > { %v507_v2 = vpop.permute.xlu0 %506 }
  0xb1   : > { %v512_v3 = vpop.permute.xlu1 %511 }
  0xb4   : > { %v497_v14 = vpop.permute.xlu0 %496 }
  0xb5   : > { %v502_v19 = vpop.permute.xlu1 %501 }
  0xe1   : > { %v1968_v53 = vpop.f32.mrf.mxu0 }
  0xe2   : > { %v2581_v8 = vadd.f32 %v1968_v53, %v507_v2 }
  0xe3   : > { %v677_v54 = vpop.f32.mrf.mxu0 }
  0xe4   : > { %v2598_v20 = vmul.f32 %v2581_v8, %v2581_v8  ;;  %v2602_v23 = vadd.f32 %v677_v54, %v497_v14 }
  0xe5   : > { %v1969_v55 = vpop.f32.mrf.mxu0 }
  0xe6   : > { %v2577_v5 = vadd.f32 %v1969_v55, %v512_v3 }
  0xe7   : > { %v680_v58 = vpop.f32.mrf.mxu0 }
  0xe8   : > { %v743_v12 = vmul.f32 %v2577_v5, %v2577_v5  ;;  %v2604_v24 = vadd.f32 %v680_v58, %v502_v19 }
  0xe9   : > { %v1972_v59 = vpop.f32.mrf.mxu0 }
  0xea   : > { %v2589_v15 = vadd.f32 %v1972_v59, %v527_v56  ;;  %v2610_v27 = vmul.f32 %v743_v12, %v2577_v5  ;;  %v741_v41 = vmul.f32 %v2604_v24, %v2604_v24 }
  0xeb   : > { %v693_v60 = vpop.f32.mrf.mxu0 }
  0xec   : > { %v746_v32 = vmul.f32 %v2589_v15, %v2589_v15  ;;  %v2622_v36 = vadd.f32 %v693_v60, %v517_v61 }
  0xed   : > { %v1973_v63 = vpop.f32.mrf.mxu0 }
  0xee   : > { %v2591_v16 = vadd.f32 %v1973_v63, %v532_v57  ;;  %v762_v55 = vmul.f32 %v746_v32, %v2589_v15  ;;  %v744_v56 = vmul.f32 %v2622_v36, %v2622_v36 }
  0xef   : > { %v696_v0 = vpop.f32.mrf.mxu0 }
  0xf0   : > { %v2612_v28 = vadd.f32 %v696_v0, %v522_v62  ;;  %v747_v33 = vmul.f32 %v2591_v16, %v2591_v16  ;;  %v760_v12 = vmul.f32 %v744_v56, %v2622_v36 }
  0xf1   : > { %v1976_v1 = vpop.f32.mrf.mxu0 }
  0xf2   : > { %v2575_v4 = vadd.f32 %v1976_v1, %v547_v49 }
  0xf3   : > { %v709_v6 = vpop.f32.mrf.mxu0 }
  0xf4   : > { %v750_v7 = vmul.f32 %v2575_v4, %v2575_v4  ;;  %v2583_v10 = vadd.f32 %v709_v6, %v537_v51 }
  0xf5   : > { %v1977_v9 = vpop.f32.mrf.mxu0 }
  0xf6   : > { %v2585_v11 = vadd.f32 %v1977_v9, %v552_v50  ;;  %v766_v17 = vmul.f32 %v750_v7, %v2575_v4  ;;  %v748_v25 = vmul.f32 %v2583_v10, %v2583_v10  ;;  %v778_v9 = vmul.f32 0.044715, %v762_v55 }
  0xf7   : > { %v712_v13 = vpop.f32.mrf.mxu0 }
  0xf8   : > { %v751_v18 = vmul.f32 %v2585_v11, %v2585_v11  ;;  %v2600_v21 = vadd.f32 %v712_v13, %v542_v52  ;;  %v782_v34 = vmul.f32 0.044715, %v766_v17  ;;  %v764_v42 = vmul.f32 %v748_v25, %v2583_v10 }
  0xf9   : > { %v1980_v22 = vpop.f32.mrf.mxu0  ;;  %v763_v52 = vmul.f32 %v747_v33, %v2591_v16  ;;  %v758_v33 = vmul.f32 %v2598_v20, %v2581_v8 }
  0xfa   : > { %v767_v26 = vmul.f32 %v751_v18, %v2585_v11  ;;  %v749_v29 = vmul.f32 %v2600_v21, %v2600_v21  ;;  %v2616_v30 = vadd.f32 %v1980_v22, %v567_v45  ;;  %v745_v45 = vmul.f32 %v2612_v28, %v2612_v28 }
  0xfb   : > { %v725_v31 = vpop.f32.mrf.mxu0  ;;  %v798_v53 = vadd.f32 %v782_v34, %v2575_v4  ;;  %v780_v59 = vmul.f32 0.044715, %v764_v42  ;;  %v779_v2 = vmul.f32 0.044715, %v763_v52  ;;  %v740_v34 = vmul.f32 %v2602_v23, %v2602_v23 }
  0xfc   : > { %v783_v35 = vmul.f32 0.044715, %v767_v26  ;;  %v765_v37 = vmul.f32 %v749_v29, %v2600_v21  ;;  %v754_v38 = vmul.f32 %v2616_v30, %v2616_v30  ;;  %v2627_v39 = vadd.f32 %v725_v31, %v557_v46 }
  0xfd   : > { %v1981_v40 = vpop.f32.mrf.mxu0  ;;  %v761_v63 = vmul.f32 %v745_v45, %v2612_v28  ;;  %v814_v3 = vmul.f32 0.7978846, %v798_v53  ;;  %v796_v17 = vadd.f32 %v780_v59, %v2583_v10  ;;  %v795_v29 = vadd.f32 %v779_v2, %v2591_v16 }
  0xfe   : > { %v799_v43 = vadd.f32 %v783_v35, %v2585_v11  ;;  %v2633_v44 = vadd.f32 %v1981_v40, %v572_v47  ;;  %v781_v49 = vmul.f32 0.044715, %v765_v37  ;;  %v770_v50 = vmul.f32 %v754_v38, %v2616_v30 }
  0xff   : > { %v752_v46 = vmul.f32 %v2627_v39, %v2627_v39  ;;  %v728_v51 = vpop.f32.mrf.mxu0  ;;  %v777_v22 = vmul.f32 0.044715, %v761_v63  ;;  %v794_v35 = vadd.f32 %v778_v9, %v2589_v15  ;;  %v776_v37 = vmul.f32 0.044715, %v760_v12 }
 0x100   : > { %v755_v54 = vmul.f32 %v2633_v44, %v2633_v44  ;;  %v2645_v47 = vadd.f32 %v728_v51, %v2573_v48  ;;  %v786_v57 = vmul.f32 0.044715, %v770_v50  ;;  %v815_v60 = vmul.f32 0.7978846, %v799_v43 }
 0x101   : > { %v768_v58 = vmul.f32 %v752_v46, %v2627_v39  ;;  %v797_v48 = vadd.f32 %v781_v49, %v2600_v21  ;;  %v812_v38 = vmul.f32 0.7978846, %v796_v17  ;;  %v757_v42 = vmul.f32 %v741_v41, %v2604_v24 }
 0x102   : > { %v771_v61 = vmul.f32 %v755_v54, %v2633_v44  ;;  %v753_v62 = vmul.f32 %v2645_v47, %v2645_v47  ;;  %v802_v0 = vadd.f32 %v786_v57, %v2616_v30  ;;  %2211 = vtanh.f32 %v815_v60 }
 0x103   : > { %v784_v1 = vmul.f32 0.044715, %v768_v58  ;;  %v813_v25 = vmul.f32 0.7978846, %v797_v48  ;;  %v775_v43 = vmul.f32 0.044715, %v2610_v27  ;;  %v793_v49 = vadd.f32 %v777_v22, %v2612_v28 }
 0x104   : > { %v787_v6 = vmul.f32 0.044715, %v771_v61  ;;  %v769_v7 = vmul.f32 %v753_v62, %v2645_v47  ;;  %v818_v13 = vmul.f32 0.7978846, %v802_v0  ;;  %v811_v45 = vmul.f32 0.7978846, %v795_v29 }
 0x105   : > { %v800_v14 = vadd.f32 %v784_v1, %v2627_v39  ;;  %v756_v20 = vmul.f32 %v740_v34, %v2602_v23  ;;  %v774_v50 = vmul.f32 0.044715, %v758_v33  ;;  %v810_v46 = vmul.f32 0.7978846, %v794_v35 }
 0x106   : > { %v803_v18 = vadd.f32 %v787_v6, %v2633_v44  ;;  %v785_v19 = vmul.f32 0.044715, %v769_v7  ;;  %2213 = vtanh.f32 %v818_v13  ;;  %v792_v51 = vadd.f32 %v776_v37, %v2622_v36 }
 0x107   : > { %v816_v26 = vmul.f32 0.7978846, %v800_v14  ;;  %2215 = vtanh.f32 %v814_v3  ;;  %v773_v52 = vmul.f32 0.044715, %v757_v42  ;;  %v791_v53 = vadd.f32 %v775_v43, %v2577_v5 }
 0x108   : > { %v819_v31 = vmul.f32 0.7978846, %v803_v18  ;;  %v801_v32 = vadd.f32 %v785_v19, %v2645_v47  ;;  %v809_v54 = vmul.f32 0.7978846, %v793_v49  ;;  %v772_v41 = vmul.f32 0.044715, %v756_v20 }
 0x109   : > { %2217 = vtanh.f32 %v816_v26  ;;  %v790_v55 = vadd.f32 %v774_v50, %v2581_v8  ;;  %v808_v27 = vmul.f32 0.7978846, %v792_v51  ;;  %v789_v57 = vadd.f32 %v773_v52, %v2604_v24 }
 0x10a   : > { %2219 = vtanh.f32 %v819_v31  ;;  %v817_v40 = vmul.f32 0.7978846, %v801_v32  ;;  %v807_v59 = vmul.f32 0.7978846, %v791_v53  ;;  %v788_v61 = vadd.f32 %v772_v41, %v2602_v23 }
 0x10b   : > { %2221 = vtanh.f32 %v813_v25  ;;  %v806_v48 = vmul.f32 0.7978846, %v790_v55  ;;  %v805_v1 = vmul.f32 0.7978846, %v789_v57 }
 0x10c   : > { %2223 = vtanh.f32 %v817_v40  ;;  %v804_v13 = vmul.f32 0.7978846, %v788_v61 }
 0x10d   : > { %2225 = vtanh.f32 %v812_v38 }
 0x10e   : > { %2227 = vtanh.f32 %v811_v45 }
 0x10f   : > { %2229 = vtanh.f32 %v810_v46  ;;  %v2212_v56 = vpop.eup %2211 }
 0x110   : > { %2231 = vtanh.f32 %v809_v54  ;;  %v847_v3 = vadd.f32 1.0, %v2212_v56 }
 0x111   : > { %2233 = vtanh.f32 %v808_v27 }
 0x112   : > { %2235 = vtanh.f32 %v807_v59  ;;  %v863_v25 = vmul.f32 0.5, %v847_v3 }
 0x113   : > { %v2214_v58 = vpop.eup %2213  ;;  %2237 = vtanh.f32 %v806_v48 }
 0x114   : > { %v2216_v60 = vpop.eup %2215  ;;  %v850_v62 = vadd.f32 1.0, %v2214_v58  ;;  %2239 = vtanh.f32 %v805_v1 }
 0x115   : > { %v846_v14 = vadd.f32 1.0, %v2216_v60  ;;  %2241 = vtanh.f32 %v804_v13 }
 0x116   : > { %v2218_v63 = vpop.eup %2217  ;;  %v866_v9 = vmul.f32 0.5, %v850_v62 }
 0x117   : > { %v2220_v0 = vpop.eup %2219  ;;  %v848_v2 = vadd.f32 1.0, %v2218_v63  ;;  %v862_v34 = vmul.f32 0.5, %v846_v14  ;;  %v2192_v14 = vld [vmem:[%s2896_s6 + $0x28] sm:$0xff]  }
 0x118   : > { %v2222_v6 = vpop.eup %2221  ;;  %v851_v7 = vadd.f32 1.0, %v2220_v0  ;;  %v882_v26 = vmul.f32 %v866_v9, %v2616_v30  ;;  %v879_v30 = vmul.f32 %v863_v25, %v2585_v11 }
 0x119   : > { %v2224_v12 = vpop.eup %2223  ;;  %v864_v19 = vmul.f32 0.5, %v848_v2  ;;  %v845_v32 = vadd.f32 1.0, %v2222_v6  ;;  %v878_v20 = vmul.f32 %v862_v34, %v2575_v4 }
 0x11a   : > { %v867_v17 = vmul.f32 0.5, %v851_v7  ;;  %v849_v18 = vadd.f32 1.0, %v2224_v12  ;;  %v2226_v22 = vpop.eup %2225 }
 0x11b   : > { %v2228_v33 = vpop.eup %2227  ;;  %v880_v37 = vmul.f32 %v864_v19, %v2627_v39  ;;  %v844_v40 = vadd.f32 1.0, %v2226_v22  ;;  %v2691_v46 = vpack.c.bf16 %v879_v30, %v878_v20  ;;  %v2195_v19 = vld [vmem:[%s2525_s22] sm:$0xff]  }
 0x11c   : > { %v883_v29 = vmul.f32 %v867_v17, %v2633_v44  ;;  %v865_v31 = vmul.f32 0.5, %v849_v18  ;;  %v2230_v42 = vpop.eup %2229  ;;  %v861_v44 = vmul.f32 0.5, %v845_v32  ;;  %v843_v45 = vadd.f32 1.0, %v2228_v33  ;;  %v2193_v17 = vld [vmem:[%s2896_s6 + $0x30] sm:$0xff]   ;;  %v2194_v18 = vld [vmem:[%s2896_s6 + $0x38] sm:$0xff]   ;;  %2030 = vmatprep.mubr.bf16.mxu0 %v2195_v19 }
 0x11d   : > { %v2232_v49 = vpop.eup %2231  ;;  %v860_v39 = vmul.f32 0.5, %v844_v40  ;;  %v842_v50 = vadd.f32 1.0, %v2230_v42 }
 0x11e   : > { %v2680_v35 = vpack.c.bf16 %v883_v29, %v882_v26  ;;  %v881_v38 = vmul.f32 %v865_v31, %v2645_v47  ;;  %v2234_v47 = vpop.eup %2233  ;;  %v877_v51 = vmul.f32 %v861_v44, %v2600_v21  ;;  %v859_v52 = vmul.f32 0.5, %v843_v45 }
 0x11f   : > { %v841_v53 = vadd.f32 1.0, %v2232_v49  ;;  %v2236_v54 = vpop.eup %2235  ;;  %v876_v11 = vmul.f32 %v860_v39, %v2583_v10  ;;  %v858_v41 = vmul.f32 0.5, %v842_v50  ;;  %v840_v55 = vadd.f32 1.0, %v2234_v47 }
 0x120   : > { %1982 = vmatprep.subr.bf16.mxu1 %v2680_v35  ;;  %v2685_v43 = vpack.c.bf16 %v881_v38, %v880_v37  ;;  %v2238_v27 = vpop.eup %2237  ;;  %v875_v57 = vmul.f32 %v859_v52, %v2591_v16  ;;  %v839_v59 = vadd.f32 1.0, %v2236_v54 }
 0x121   : > { %1983 = vmatpush3.bf16.msra.mxu1 %v2680_v35  ;;  %v2240_v4 = vpop.eup %2239  ;;  %v2697_v56 = vpack.c.bf16 %v877_v51, %v876_v11  ;;  %v857_v58 = vmul.f32 0.5, %v841_v53  ;;  %v874_v60 = vmul.f32 %v858_v41, %v2589_v15  ;;  %v856_v61 = vmul.f32 0.5, %v840_v55  ;;  %v2196_v11 = vld [vmem:[%s2525_s22 + $0x8] sm:$0xff]   ;;  %v2197_v41 = vld [vmem:[%s2525_s22 + $0x10] sm:$0xff]   ;;  %v2198_v55 = vld [vmem:[%s2525_s22 + $0x18] sm:$0xff]  }
 0x122   : > { %1984 = vmatprep.subr.bf16.mxu1 %v2685_v43  ;;  %v2242_v21 = vpop.eup %2241  ;;  %v838_v62 = vadd.f32 1.0, %v2238_v27  ;;  %v855_v48 = vmul.f32 0.5, %v839_v59  ;;  %v837_v0 = vadd.f32 1.0, %v2240_v4  ;;  %v2199_v27 = vld [vmem:[%s2525_s22 + $0x20] sm:$0xff]   ;;  %v2200_v4 = vld [vmem:[%s2525_s22 + $0x28] sm:$0xff]   ;;  %v1096_v59 = vpop.permute.xlu0 %1095 }
 0x123   : > { %v2703_v10 = vpack.c.bf16 %v875_v57, %v874_v60  ;;  %v873_v63 = vmul.f32 %v857_v58, %v2612_v28  ;;  %v872_v16 = vmul.f32 %v856_v61, %v2622_v36  ;;  %v836_v2 = vadd.f32 1.0, %v2242_v21  ;;  %v2201_v57 = vld [vmem:[%s2525_s22 + $0x30] sm:$0xff]   ;;  %v2202_v58 = vld [vmem:[%s2525_s22 + $0x38] sm:$0xff]   ;;  %v1101_v21 = vpop.permute.xlu1 %1100  ;;  %s2358_s22 = smov [#allocation2]  }
 0x124   : > { %v854_v1 = vmul.f32 0.5, %v838_v62  ;;  %v871_v15 = vmul.f32 %v855_v48, %v2577_v5  ;;  %v853_v6 = vmul.f32 0.5, %v837_v0  ;;  %v2188_v5 = vld [vmem:[%s2896_s6 + $0x8] sm:$0xff]   ;;  %s2281_s30 = sshll.u32 %s2358_s22, 4  ;;  %s2282_s30 = int_to_ptr.vmem [resolvable:$false] %s2281_s30 }
 0x125   : > { %1985 = vmatpush3.bf16.msra.mxu1 %v2685_v43  ;;  %v2709_v3 = vpack.c.bf16 %v873_v63, %v872_v16  ;;  %v852_v7 = vmul.f32 0.5, %v836_v2  ;;  %p2284_p1 = scmp.lt.s32.totalorder %s2846_s11, %s2282_s30 }
 0x126   : > { %1986 = vmatprep.subr.bf16.mxu1 %v2691_v46  ;;  %v870_v28 = vmul.f32 %v854_v1, %v2581_v8  ;;  %v869_v12 = vmul.f32 %v853_v6, %v2604_v24  ;;  %v2189_v8 = vld [vmem:[%s2896_s6 + $0x10] sm:$0xff]   ;;  %v2191_v24 = vld [vmem:[%s2896_s6 + $0x20] sm:$0xff]   ;;  %v1106_v60 = vpop.permute.xlu0 %1105 }
 0x127   : > { %v868_v36 = vmul.f32 %v852_v7, %v2602_v23  ;;  %v2190_v23 = vld [vmem:[%s2896_s6 + $0x18] sm:$0xff]   ;;  %v1111_v61 = vpop.permute.xlu1 %1110 }
 0x128   : > { %v2715_v9 = vpack.c.bf16 %v871_v15, %v870_v28 }
 0x129   : > { %1987 = vmatpush3.bf16.msra.mxu1 %v2691_v46  ;;  %v2721_v13 = vpack.c.bf16 %v869_v12, %v868_v36 }
 0x12a   : > { %1988 = vmatprep.subr.bf16.mxu1 %v2697_v56  ;;  %v1116_v62 = vpop.permute.xlu0 %1115 }
 0x12b   : > { %v1121_v63 = vpop.permute.xlu1 %1120 }
 0x12d   : > { %1989 = vmatpush3.bf16.msra.mxu1 %v2697_v56 }
 0x12e   : > { %1990 = vmatprep.subr.bf16.mxu1 %v2703_v10  ;;  %v1126_v16 = vpop.permute.xlu0 %1125 }
 0x12f   : > { %v1131_v1 = vpop.permute.xlu1 %1130 }
 0x131   : > { %1991 = vmatpush3.bf16.msra.mxu1 %v2703_v10 }
 0x132   : > { %1992 = vmatprep.subr.bf16.mxu1 %v2709_v3  ;;  %v1136_v28 = vpop.permute.xlu0 %1135 }
 0x133   : > { %v1141_v7 = vpop.permute.xlu1 %1140 }
 0x135   : > { %1993 = vmatpush3.bf16.msra.mxu1 %v2709_v3 }
 0x136   : > { %1994 = vmatprep.subr.bf16.mxu1 %v2715_v9 }
 0x139   : > { %1995 = vmatpush3.bf16.msra.mxu1 %v2715_v9 }
 0x13a   : > { %1996 = vmatprep.subr.bf16.mxu1 %v2721_v13 }
 0x13d   : > { %1997 = vmatpush3.bf16.msra.mxu1 %v2721_v13 }
 0x140   : > { %1999 = vmatmul.mubr.bf16.vlgmr.msra.gmra.mxu1 %v2188_v5 }
 0x141   : > { %2002 = vmatprep.mubr.bf16.mxu1 %v2189_v8  ;;  %v1146_v8 = vpop.permute.xlu0 %1145 }
 0x148   : > { %2003 = vmatmul.mubr.bf16.gmra.mxu1 %v2190_v23  ;;  %v1151_v23 = vpop.permute.xlu1 %1150 }
 0x149   : > { %2006 = vmatprep.mubr.bf16.mxu1 %v2191_v24 }
 0x14c   : > { %v1161_v19 = vpop.permute.xlu1 %1160 }
 0x150   : > { %2007 = vmatmul.mubr.bf16.gmra.mxu1 %v2192_v14 }
 0x151   : > { %2010 = vmatprep.mubr.bf16.mxu1 %v2193_v17 }
 0x158   : > { %2011 = vmatmul.mubr.bf16.gmra.mxu1 %v2194_v18  ;;  %v1156_v18 = vpop.permute.xlu0 %1155 }
 0x200   : > { %v2000_v22 = vpop.f32.mrf.mxu1 }
 0x202   : > { %v990_v25 = vpop.f32.mrf.mxu1 }
 0x204   : > { %v2001_v26 = vpop.f32.mrf.mxu1 }
 0x205   : > { %v1070_v53 = vpack.c.bf16 %v2001_v26, %v2000_v22 }
 0x206   : > { %v993_v29 = vpop.f32.mrf.mxu1 }
 0x207   : > { %v1069_v54 = vpack.c.bf16 %v993_v29, %v990_v25 }
 0x208   : > { %v2004_v31 = vpop.f32.mrf.mxu1 }
 0x20a   : > { %v1006_v32 = vpop.f32.mrf.mxu1 }
 0x20c   : > { %v2005_v33 = vpop.f32.mrf.mxu1 }
 0x20d   : > { %v1072_v51 = vpack.c.bf16 %v2005_v33, %v2004_v31 }
 0x20e   : > { %v1009_v34 = vpop.f32.mrf.mxu1 }
 0x20f   : > { %v1071_v52 = vpack.c.bf16 %v1009_v34, %v1006_v32 }
 0x210   : > { %v2008_v37 = vpop.f32.mrf.mxu1 }
 0x212   : > { %v1022_v38 = vpop.f32.mrf.mxu1 }
 0x214   : > { %v2009_v40 = vpop.f32.mrf.mxu1 }
 0x215   : > { %v1074_v50 = vpack.c.bf16 %v2009_v40, %v2008_v37 }
 0x216   : > { %v1025_v42 = vpop.f32.mrf.mxu1 }
 0x217   : > { %v1073_v47 = vpack.c.bf16 %v1025_v42, %v1022_v38 }
 0x218   : > { %v2012_v30 = vpop.f32.mrf.mxu1 }
 0x21a   : > { %v1038_v44 = vpop.f32.mrf.mxu1 }
 0x21c   : > { %v2013_v45 = vpop.f32.mrf.mxu1 }
 0x21d   : > { %v1076_v49 = vpack.c.bf16 %v2013_v45, %v2012_v30 }
 0x21e   : > { %v1041_v20 = vpop.f32.mrf.mxu1 }
 0x21f   : > { %v1075_v39 = vpack.c.bf16 %v1041_v20, %v1038_v44  ;;  %2014 = vmatprep.subr.bf16.mxu0 %v1076_v49  ;;  %v1166_v44 = vpop.permute.xlu0 %1165 }
 0x220   : > { %2015 = vmatpush3.bf16.msra.mxu0 %v1076_v49 }
 0x221   : > { %2016 = vmatprep.subr.bf16.mxu0 %v1075_v39 }
 0x224   : > { %2017 = vmatpush3.bf16.msra.mxu0 %v1075_v39  ;;  %v1171_v39 = vpop.permute.xlu1 %1170 }
 0x225   : > { %2018 = vmatprep.subr.bf16.mxu0 %v1074_v50 }
 0x228   : > { %2019 = vmatpush3.bf16.msra.mxu0 %v1074_v50 }
 0x229   : > { %2020 = vmatprep.subr.bf16.mxu0 %v1073_v47 }
 0x22c   : > { %2021 = vmatpush3.bf16.msra.mxu0 %v1073_v47 }
 0x22d   : > { %2022 = vmatprep.subr.bf16.mxu0 %v1072_v51 }
 0x230   : > { %2023 = vmatpush3.bf16.msra.mxu0 %v1072_v51 }
 0x231   : > { %2024 = vmatprep.subr.bf16.mxu0 %v1071_v52 }
 0x234   : > { %2025 = vmatpush3.bf16.msra.mxu0 %v1071_v52 }
 0x235   : > { %2026 = vmatprep.subr.bf16.mxu0 %v1070_v53 }
 0x238   : > { %2027 = vmatpush3.bf16.msra.mxu0 %v1070_v53 }
 0x239   : > { %2028 = vmatprep.subr.bf16.mxu0 %v1069_v54 }
 0x23c   : > { %2029 = vmatpush3.bf16.msra.mxu0 %v1069_v54 }
 0x23f   : > { %2031 = vmatmul.mubr.bf16.vlgmr.msra.gmra.mxu0 %v2196_v11 }
 0x240   : > { %2034 = vmatprep.mubr.bf16.mxu0 %v2197_v41 }
 0x247   : > { %2035 = vmatmul.mubr.bf16.gmra.mxu0 %v2198_v55 }
 0x248   : > { %2038 = vmatprep.mubr.bf16.mxu0 %v2199_v27 }
 0x24f   : > { %2039 = vmatmul.mubr.bf16.gmra.mxu0 %v2200_v4 }
 0x250   : > { %2042 = vmatprep.mubr.bf16.mxu0 %v2201_v57 }
 0x257   : > { %2043 = vmatmul.mubr.bf16.gmra.mxu0 %v2202_v58 }
 0x2ff   : > { %v2032_v48 = vpop.f32.mrf.mxu0 }
 0x300   : > { %v1264_v37 = vadd.f32 %v2032_v48, %v1106_v60 }
 0x301   : > { %v1255_v0 = vpop.f32.mrf.mxu0 }
 0x302   : > { %v1256_v38 = vadd.f32 %v1255_v0, %v1096_v59  ;;  %v2356_v0 = vmov 0.0  }
 0x303   : > { %v2033_v2 = vpop.f32.mrf.mxu0  ;;  %2078 = vmatprep.subr.bf16.mxu0 %v2356_v0  ;;  %2094 = vmatprep.mubr.msk.bf16.mxu0 %vm2357_vm2, %v2356_v0 }
 0x304   : > { %v1267_v33 = vadd.f32 %v2033_v2, %v1111_v61 }
 0x305   : > { %v1258_v15 = vpop.f32.mrf.mxu0 }
 0x306   : > { %v1259_v40 = vadd.f32 %v1258_v15, %v1101_v21  ;;  %v2203_v21 = vld [vmem:[%s2535_s12] sm:$0xff]  }
 0x307   : > { %v2036_v6 = vpop.f32.mrf.mxu0  ;;  %2062 = vmatprep.mubr.bf16.mxu1 %v2203_v21 }
 0x308   : > { %v2757_v26 = vadd.f32 %v2036_v6, %v1126_v16 }
 0x309   : > { %v1271_v12 = vpop.f32.mrf.mxu0 }
 0x30a   : > { %v1272_v29 = vadd.f32 %v1271_v12, %v1116_v62  ;;  %v1320_v50 = vmax.f32 %v1264_v37, %v2757_v26 }
 0x30b   : > { %v2037_v36 = vpop.f32.mrf.mxu0 }
 0x30c   : > { %v2755_v25 = vadd.f32 %v2037_v36, %v1131_v1  ;;  %v1318_v47 = vmax.f32 %v1256_v38, %v1272_v29 }
 0x30d   : > { %v1274_v5 = vpop.f32.mrf.mxu0 }
 0x30e   : > { %v1275_v31 = vadd.f32 %v1274_v5, %v1121_v63  ;;  %v1321_v45 = vmax.f32 %v1267_v33, %v2755_v25 }
 0x30f   : > { %v2040_v24 = vpop.f32.mrf.mxu0 }
 0x310   : > { %v2761_v42 = vadd.f32 %v2040_v24, %v1146_v8  ;;  %v1319_v51 = vmax.f32 %v1259_v40, %v1275_v31 }
 0x311   : > { %v1287_v14 = vpop.f32.mrf.mxu0 }
 0x312   : > { %v1288_v49 = vadd.f32 %v1287_v14, %v1136_v28  ;;  %v1324_v55 = vmax.f32 %v1320_v50, %v2761_v42 }
 0x313   : > { %v2041_v17 = vpop.f32.mrf.mxu0 }
 0x314   : > { %v2759_v34 = vadd.f32 %v2041_v17, %v1151_v23  ;;  %v1322_v4 = vmax.f32 %v1318_v47, %v1288_v49 }
 0x315   : > { %v1290_v22 = vpop.f32.mrf.mxu0 }
 0x316   : > { %v1291_v20 = vadd.f32 %v1290_v22, %v1141_v7  ;;  %v1325_v53 = vmax.f32 %v1321_v45, %v2759_v34 }
 0x317   : > { %v2044_v32 = vpop.f32.mrf.mxu0 }
 0x318   : > { %v2766_v54 = vadd.f32 %v2044_v32, %v1166_v44  ;;  %v1323_v57 = vmax.f32 %v1319_v51, %v1291_v20 }
 0x319   : > { %v1303_v30 = vpop.f32.mrf.mxu0 }
 0x31a   : > { %v2768_v11 = vadd.f32 %v1303_v30, %v1156_v18  ;;  %v1328_v60 = vmax.f32 %v1324_v55, %v2766_v54 }
 0x31b   : > { %v2045_v52 = vpop.f32.mrf.mxu0 }
 0x31c   : > { %v2770_v41 = vadd.f32 %v2045_v52, %v1171_v39  ;;  %v1326_v61 = vmax.f32 %v1322_v4, %v2768_v11 }
 0x31d   : > { %v1306_v27 = vpop.f32.mrf.mxu0 }
 0x31e   : > { %v1329_v58 = vmax.f32 %v1325_v53, %v2770_v41  ;;  %v2774_v59 = vadd.f32 %v1306_v27, %v1161_v19 }
 0x320   : > { %v1327_v62 = vmax.f32 %v1323_v57, %v2774_v59  ;;  %v1331_v63 = vmax.f32 %v1328_v60, %v1329_v58 }
 0x322   : > { %v1330_v48 = vmax.f32 %v1326_v61, %v1327_v62 }
 0x324   : > { %v1332_v16 = vmax.f32 %v1330_v48, %v1331_v63 }
 0x326   : > { %v1333_v1 = vrot.slane %v1332_v16, 4 }
 0x328   : > { %v1334_v2 = vmax.f32 %v1332_v16, %v1333_v1 }
 0x32a   : > { %v1335_v15 = vrot.slane %v1334_v2, 2 }
 0x32c   : > { %v1336_v6 = vmax.f32 %v1334_v2, %v1335_v15 }
 0x32e   : > { %v1337_v28 = vrot.slane %v1336_v6, 1 }
 0x330   : > { %v1338_v7 = vmax.f32 %v1336_v6, %v1337_v28 }
 0x332   : > { %v1339_v12 = vsub.f32 %v1256_v38, %v1338_v7  ;;  %v1340_v36 = vsub.f32 %v1259_v40, %v1338_v7  ;;  %v1341_v5 = vsub.f32 %v1264_v37, %v1338_v7  ;;  %v1342_v8 = vsub.f32 %v1267_v33, %v1338_v7 }
 0x333   : > { %v1343_v24 = vsub.f32 %v1272_v29, %v1338_v7  ;;  %v1344_v18 = vsub.f32 %v1275_v31, %v1338_v7  ;;  %v1345_v22 = vsub.f32 %v2757_v26, %v1338_v7  ;;  %v1346_v30 = vsub.f32 %v2755_v25, %v1338_v7 }
 0x334   : > { %v1355_v23 = vmul.f32 1.442695, %v1339_v12  ;;  %v1357_v14 = vmul.f32 1.442695, %v1340_v36  ;;  %v1359_v17 = vmul.f32 1.442695, %v1341_v5  ;;  %v1347_v38 = vsub.f32 %v1288_v49, %v1338_v7 }
 0x335   : > { %v1361_v19 = vmul.f32 1.442695, %v1342_v8  ;;  %v1363_v32 = vmul.f32 1.442695, %v1343_v24  ;;  %v1365_v44 = vmul.f32 1.442695, %v1344_v18  ;;  %v1348_v33 = vsub.f32 %v1291_v20, %v1338_v7 }
 0x336   : > { %2243 = vpow2.f32 %v1355_v23  ;;  %v1367_v37 = vmul.f32 1.442695, %v1345_v22  ;;  %v1369_v29 = vmul.f32 1.442695, %v1346_v30  ;;  %v1349_v40 = vsub.f32 %v2761_v42, %v1338_v7 }
 0x337   : > { %2245 = vpow2.f32 %v1357_v14  ;;  %v1371_v31 = vmul.f32 1.442695, %v1347_v38  ;;  %v1350_v26 = vsub.f32 %v2759_v34, %v1338_v7  ;;  %v1373_v39 = vmul.f32 1.442695, %v1348_v33 }
 0x338   : > { %2247 = vpow2.f32 %v1359_v17  ;;  %v1351_v25 = vsub.f32 %v2768_v11, %v1338_v7  ;;  %v1375_v49 = vmul.f32 1.442695, %v1349_v40  ;;  %v1352_v42 = vsub.f32 %v2774_v59, %v1338_v7 }
 0x339   : > { %2249 = vpow2.f32 %v1361_v19  ;;  %v1377_v51 = vmul.f32 1.442695, %v1350_v26  ;;  %v1353_v53 = vsub.f32 %v2766_v54, %v1338_v7  ;;  %v1354_v58 = vsub.f32 %v2770_v41, %v1338_v7 }
 0x33a   : > { %2251 = vpow2.f32 %v1363_v32  ;;  %v1379_v55 = vmul.f32 1.442695, %v1351_v25  ;;  %v1381_v4 = vmul.f32 1.442695, %v1352_v42 }
 0x33b   : > { %2253 = vpow2.f32 %v1365_v44  ;;  %v1383_v60 = vmul.f32 1.442695, %v1353_v53  ;;  %v1385_v63 = vmul.f32 1.442695, %v1354_v58 }
 0x33c   : > { %2255 = vpow2.f32 %v1367_v37 }
 0x33d   : > { %2257 = vpow2.f32 %v1369_v29 }
 0x33e   : > { %2259 = vpow2.f32 %v1371_v31 }
 0x33f   : > { %2261 = vpow2.f32 %v1373_v39 }
 0x340   : > { %2263 = vpow2.f32 %v1375_v49 }
 0x341   : > { %2265 = vpow2.f32 %v1377_v51 }
 0x342   : > { %2267 = vpow2.f32 %v1379_v55 }
 0x343   : > { %v2784_v45 = vpop.eup %2243  ;;  %2269 = vpow2.f32 %v1381_v4 }
 0x344   : > { %v2787_v50 = vpop.eup %2245  ;;  %2271 = vpow2.f32 %v1383_v60 }
 0x345   : > { %v1387_v20 = vadd.f32 %v2787_v50, %v2784_v45  ;;  %v2792_v47 = vpop.eup %2247  ;;  %2273 = vpow2.f32 %v1385_v63 }
 0x346   : > { %v2250_v34 = vpop.eup %2249 }
 0x347   : > { %v1388_v52 = vadd.f32 %v2792_v47, %v1387_v20  ;;  %v2252_v11 = vpop.eup %2251 }
 0x348   : > { %v2254_v21 = vpop.eup %2253 }
 0x349   : > { %v1389_v27 = vadd.f32 %v2250_v34, %v1388_v52  ;;  %v2256_v61 = vpop.eup %2255 }
 0x34a   : > { %v2258_v48 = vpop.eup %2257 }
 0x34b   : > { %v1390_v57 = vadd.f32 %v2252_v11, %v1389_v27  ;;  %v2260_v16 = vpop.eup %2259 }
 0x34c   : > { %v2262_v2 = vpop.eup %2261 }
 0x34d   : > { %v1391_v59 = vadd.f32 %v2254_v21, %v1390_v57  ;;  %v2264_v6 = vpop.eup %2263 }
 0x34e   : > { %v2266_v12 = vpop.eup %2265 }
 0x34f   : > { %v1392_v62 = vadd.f32 %v2256_v61, %v1391_v59  ;;  %v2268_v7 = vpop.eup %2267 }
 0x350   : > { %v2270_v5 = vpop.eup %2269 }
 0x351   : > { %v1393_v54 = vadd.f32 %v2258_v48, %v1392_v62  ;;  %v2272_v23 = vpop.eup %2271 }
 0x352   : > { %v2274_v14 = vpop.eup %2273 }
 0x353   : > { %v1394_v1 = vadd.f32 %v2260_v16, %v1393_v54 }
 0x355   : > { %v1395_v15 = vadd.f32 %v2262_v2, %v1394_v1 }
 0x357   : > { %v1396_v28 = vadd.f32 %v2264_v6, %v1395_v15 }
 0x359   : > { %v1397_v41 = vadd.f32 %v2266_v12, %v1396_v28 }
 0x35b   : > { %v1398_v36 = vadd.f32 %v2268_v7, %v1397_v41 }
 0x35d   : > { %v1399_v8 = vadd.f32 %v2270_v5, %v1398_v36 }
 0x35f   : > { %v1400_v24 = vadd.f32 %v2272_v23, %v1399_v8 }
 0x361   : > { %v1401_v17 = vadd.f32 %v2274_v14, %v1400_v24 }
 0x363   : > { %v1402_v18 = vrot.slane %v1401_v17, 4 }
 0x365   : > { %v1403_v19 = vadd.f32 %v1402_v18, %v1401_v17  ;;  %v1595_v18 = vld [vmem:[%s2898_s8] sm:$0x3] }
 0x367   : > { %v1404_v22 = vrot.slane %v1403_v19, 2 }
 0x369   : > { %v1405_v32 = vadd.f32 %v1404_v22, %v1403_v19 }
 0x36b   : > { %v1406_v30 = vrot.slane %v1405_v32, 1 }
 0x36d   : > { %v1407_v44 = vadd.f32 %v1406_v30, %v1405_v32 }
 0x36f   : > { %2275 = vrcp.f32 %v1407_v44 }
 0x37c   : > { %v2276_v38 = vpop.eup %2275 }
 0x37d   : > { %v1423_v37 = vmul.f32 %v2276_v38, %v2272_v23  ;;  %v1424_v33 = vmul.f32 %v2276_v38, %v2274_v14  ;;  %v1421_v29 = vmul.f32 %v2276_v38, %v2268_v7  ;;  %v1422_v40 = vmul.f32 %v2276_v38, %v2270_v5 }
 0x37e   : > { %v1419_v26 = vmul.f32 %v2276_v38, %v2264_v6  ;;  %v1415_v39 = vmul.f32 %v2276_v38, %v2256_v61  ;;  %v1416_v25 = vmul.f32 %v2276_v38, %v2258_v48  ;;  %v1420_v20 = vmul.f32 %v2276_v38, %v2266_v12 }
 0x37f   : > { %v1448_v31 = vpack.c.bf16 %v1424_v33, %v1423_v37  ;;  %v1447_v49 = vpack.c.bf16 %v1422_v40, %v1421_v29  ;;  %v1413_v42 = vmul.f32 %v2276_v38, %v2252_v11  ;;  %v1414_v51 = vmul.f32 %v2276_v38, %v2254_v21  ;;  %v2208_v21 = vld [vmem:[%s2535_s12 + $0x28] sm:$0xff]  }
 0x380   : > { %v1444_v52 = vpack.c.bf16 %v1416_v25, %v1415_v39  ;;  %v1411_v53 = vmul.f32 %v2276_v38, %v2792_v47  ;;  %v1412_v55 = vmul.f32 %v2276_v38, %v2250_v34  ;;  %v1409_v27 = vmul.f32 %v2276_v38, %v2784_v45  ;;  %v2204_v45 = vld [vmem:[%s2535_s12 + $0x8] sm:$0xff]   ;;  %v2206_v47 = vld [vmem:[%s2535_s12 + $0x18] sm:$0xff]   ;;  %v2207_v34 = vld [vmem:[%s2535_s12 + $0x20] sm:$0xff]  }
 0x381   : > { %2046 = vmatprep.subr.bf16.mxu1 %v1448_v31  ;;  %v1443_v4 = vpack.c.bf16 %v1414_v51, %v1413_v42  ;;  %v1410_v57 = vmul.f32 %v2276_v38, %v2787_v50  ;;  %v1446_v59 = vpack.c.bf16 %v1420_v20, %v1419_v26  ;;  %v1417_v61 = vmul.f32 %v2276_v38, %v2260_v16  ;;  %v2205_v50 = vld [vmem:[%s2535_s12 + $0x10] sm:$0xff]  }
 0x382   : > { %2047 = vmatpush3.bf16.msra.mxu1 %v1448_v31  ;;  %v1442_v58 = vpack.c.bf16 %v1412_v55, %v1411_v53  ;;  %v1418_v62 = vmul.f32 %v2276_v38, %v2262_v2 }
 0x383   : > { %2048 = vmatprep.subr.bf16.mxu1 %v1447_v49  ;;  %v1441_v60 = vpack.c.bf16 %v1410_v57, %v1409_v27 }
 0x384   : > { %v1445_v11 = vpack.c.bf16 %v1418_v62, %v1417_v61 }
 0x386   : > { %2049 = vmatpush3.bf16.msra.mxu1 %v1447_v49 }
 0x387   : > { %2050 = vmatprep.subr.bf16.mxu1 %v1446_v59 }
 0x38a   : > { %2051 = vmatpush3.bf16.msra.mxu1 %v1446_v59 }
 0x38b   : > { %2052 = vmatprep.subr.bf16.mxu1 %v1445_v11 }
 0x38e   : > { %2053 = vmatpush3.bf16.msra.mxu1 %v1445_v11 }
 0x38f   : > { %2054 = vmatprep.subr.bf16.mxu1 %v1444_v52 }
 0x392   : > { %2055 = vmatpush3.bf16.msra.mxu1 %v1444_v52 }
 0x393   : > { %2056 = vmatprep.subr.bf16.mxu1 %v1443_v4 }
 0x396   : > { %2057 = vmatpush3.bf16.msra.mxu1 %v1443_v4 }
 0x397   : > { %2058 = vmatprep.subr.bf16.mxu1 %v1442_v58 }
 0x39a   : > { %2059 = vmatpush3.bf16.msra.mxu1 %v1442_v58 }
 0x39b   : > { %2060 = vmatprep.subr.bf16.mxu1 %v1441_v60 }
 0x39e   : > { %2061 = vmatpush3.bf16.msra.mxu1 %v1441_v60 }
 0x39f   : > { %2098 = vmatprep.subr.bf16.mxu1 %v2356_v0 }
 0x3a1   : > { %2063 = vmatmul.mubr.bf16.vlgmr.msra.gmra.mxu1 %v2204_v45 }
 0x3a2   : > { %2099 = vmatpush3.bf16.msra.mxu1 %v2680_v35  ;;  %2066 = vmatprep.mubr.bf16.mxu1 %v2205_v50  ;;  %v2209_v35 = vld [vmem:[%s2535_s12 + $0x30] sm:$0xff]  }
 0x3a3   : > { %2100 = vmatprep.subr.bf16.mxu1 %v2356_v0 }
 0x3a6   : > { %2101 = vmatpush3.bf16.msra.mxu1 %v2685_v43  ;;  %v2210_v43 = vld [vmem:[%s2535_s12 + $0x38] sm:$0xff]   ;;  %s2283_s12 = scalar_lea.vmem %s2282_s30, 128 }
 0x3a7   : > { %2102 = vmatprep.subr.bf16.mxu1 %v2356_v0  ;;  %p2285_p2 = scmp.lt.s32.totalorder %s2283_s12, %s2277_s28 }
 0x3a9   : > { %2067 = vmatmul.mubr.bf16.gmra.mxu1 %v2206_v47  ;;  %p2286_p3 = por %p2285_p2, %p2284_p1 }
 0x3aa   : > { %2103 = vmatpush3.bf16.msra.mxu1 %v2691_v46  ;;  %2070 = vmatprep.mubr.bf16.mxu1 %v2207_v34  ;;  %v1594_v46 = vld [vmem:[%s2897_s7] sm:$0x3] }
 0x3ab   : > { %2104 = vmatprep.subr.bf16.mxu1 %v2356_v0  ;;  %p2287_p5 = pnand %p2286_p3, %p2280_p0 }
 0x3ae   : > { %2105 = vmatpush3.bf16.msra.mxu1 %v2697_v56 }
 0x3af   : > { %2106 = vmatprep.subr.bf16.mxu1 %v2356_v0 }
 0x3b1   : > { %2071 = vmatmul.mubr.bf16.gmra.mxu1 %v2208_v21 }
 0x3b2   : > { %2107 = vmatpush3.bf16.msra.mxu1 %v2703_v10  ;;  %2074 = vmatprep.mubr.bf16.mxu1 %v2209_v35 }
 0x3b3   : > { %2108 = vmatprep.subr.bf16.mxu1 %v2356_v0 }
 0x3b6   : > { %2109 = vmatpush3.bf16.msra.mxu1 %v2709_v3 }
 0x3b7   : > { %2110 = vmatprep.subr.bf16.mxu1 %v2356_v0 }
 0x3b9   : > { %2075 = vmatmul.mubr.bf16.gmra.mxu1 %v2210_v43 }
 0x3ba   : > { %2111 = vmatpush3.bf16.msra.mxu1 %v2715_v9  ;;  %2114 = vmatprep.mubr.msk.bf16.mxu1 %vm2357_vm2, %v2356_v0 }
 0x3bb   : > { %2112 = vmatprep.subr.bf16.mxu1 %v2356_v0 }
 0x3be   : > { %2113 = vmatpush3.bf16.msra.mxu1 %v2721_v13 }
 0x3c1   : > { %2115 = vmatmul.mubr.bf16.vlgmr.msra.gmra.mxu1 %v1594_v46 }
 0x461   : > { %v2064_v56 = vpop.f32.mrf.mxu1 }
 0x463   : > { %v1531_v10 = vpop.f32.mrf.mxu1 }
 0x465   : > { %v2065_v3 = vpop.f32.mrf.mxu1 }
 0x466   : > { %v1597_v14 = vpack.c.bf16 %v2065_v3, %v2064_v56 }
 0x467   : > { %v1534_v63 = vpop.f32.mrf.mxu1 }
 0x468   : > { %v1596_v17 = vpack.c.bf16 %v1534_v63, %v1531_v10 }
 0x469   : > { %v2068_v48 = vpop.f32.mrf.mxu1 }
 0x46b   : > { %v1547_v9 = vpop.f32.mrf.mxu1 }
 0x46d   : > { %v2069_v54 = vpop.f32.mrf.mxu1 }
 0x46e   : > { %v1599_v23 = vpack.c.bf16 %v2069_v54, %v2068_v48 }
 0x46f   : > { %v1550_v16 = vpop.f32.mrf.mxu1 }
 0x470   : > { %v1598_v24 = vpack.c.bf16 %v1550_v16, %v1547_v9 }
 0x471   : > { %v2072_v1 = vpop.f32.mrf.mxu1 }
 0x473   : > { %v1563_v13 = vpop.f32.mrf.mxu1 }
 0x475   : > { %v2073_v2 = vpop.f32.mrf.mxu1 }
 0x476   : > { %v1601_v5 = vpack.c.bf16 %v2073_v2, %v2072_v1 }
 0x477   : > { %v1566_v15 = vpop.f32.mrf.mxu1 }
 0x478   : > { %v1600_v8 = vpack.c.bf16 %v1566_v15, %v1563_v13 }
 0x479   : > { %v2076_v6 = vpop.f32.mrf.mxu1 }
 0x47b   : > { %v1579_v28 = vpop.f32.mrf.mxu1 }
 0x47d   : > { %v2077_v12 = vpop.f32.mrf.mxu1 }
 0x47e   : > { %v1603_v41 = vpack.c.bf16 %v2077_v12, %v2076_v6 }
 0x47f   : > { %v1582_v7 = vpop.f32.mrf.mxu1 }
 0x480   : > { %2079 = vmatpush3.bf16.msra.mxu0 %v1603_v41  ;;  %v1602_v36 = vpack.c.bf16 %v1582_v7, %v1579_v28 }
 0x481   : > { %2080 = vmatprep.subr.bf16.mxu0 %v2356_v0  ;;  %v1678_v19 = vpop.f32.mrf.mxu1 }
 0x483   : > { %v2116_v22 = vpop.f32.mrf.mxu1 }
 0x484   : > { %2081 = vmatpush3.bf16.msra.mxu0 %v1602_v36 }
 0x485   : > { %2082 = vmatprep.subr.bf16.mxu0 %v2356_v0  ;;  %v1681_v32 = vpop.f32.mrf.mxu1 }
 0x487   : > { %v2117_v30 = vpop.f32.mrf.mxu1 }
 0x488   : > { %2083 = vmatpush3.bf16.msra.mxu0 %v1601_v5 }
 0x489   : > { %2084 = vmatprep.subr.bf16.mxu0 %v2356_v0 }
 0x48c   : > { %2085 = vmatpush3.bf16.msra.mxu0 %v1600_v8 }
 0x48d   : > { %2086 = vmatprep.subr.bf16.mxu0 %v2356_v0 }
 0x490   : > { %2087 = vmatpush3.bf16.msra.mxu0 %v1599_v23 }
 0x491   : > { %2088 = vmatprep.subr.bf16.mxu0 %v2356_v0 }
 0x494   : > { %2089 = vmatpush3.bf16.msra.mxu0 %v1598_v24 }
 0x495   : > { %2090 = vmatprep.subr.bf16.mxu0 %v2356_v0 }
 0x498   : > { %2091 = vmatpush3.bf16.msra.mxu0 %v1597_v14 }
 0x499   : > { %2092 = vmatprep.subr.bf16.mxu0 %v2356_v0  ;;  %v1688_v0 = vpop.permute.xlu0 %1687 }
 0x49c   : > { %2093 = vmatpush3.bf16.msra.mxu0 %v1596_v17 }
 0x49f   : > { %2095 = vmatmul.mubr.bf16.vlgmr.msra.gmra.mxu0 %v1595_v18 }
 0x55f   : > { %v1638_v44 = vpop.f32.mrf.mxu0 }
 0x560   : > { %v1679_v38 = vadd.f32 %v1678_v19, %v1638_v44 }
 0x561   : > { %v2096_v37 = vpop.f32.mrf.mxu0 }
 0x562   : > { %v1690_v33 = vadd.f32 %v1688_v0, %v1679_v38 }
 0x563   : > { %v1641_v29 = vpop.f32.mrf.mxu0 }
 0x564   : > { %1691 = vst [vmem:[%s432_s29] sm:$0xf] %v1690_v33 }
 0x565   : > { %v2097_v40 = vpop.f32.mrf.mxu0 }
 0x566   : > { %2290 = shalt.err (!%p2287_p5)
}
 0x567   : > { %s2291_s21 = scalar_lea.hbm %s2844_s24, 64  ;;  %s2295_s0 = scalar_lea.hbm %s2900_s10, 128 }
 0x568   : > { %p2292_p6 = scmp.ne.s32.totalorder %s2844_s24, %s2291_s21  ;;  %p2296_p10 = scmp.lt.s32.totalorder %s2844_s24, %s2900_s10 }
 0x569   : > { %p2297_p11 = scmp.lt.s32.totalorder %s2295_s0, %s2291_s21 }
 0x56a   : > { %p2293_p7 = pnand %p2292_p6, %p2454_p4 }
 0x56b   : > { %p2298_p12 = por %p2297_p11, %p2296_p10 }
 0x56c   : > { %p2294_p9 = pneg %p2293_p7 }
 0x56e   : > { %p2299_p13 = pnand %p2298_p12, %p2294_p9 }
 0x570   : > { %2302 = shalt.err (!%p2299_p13)
}
 0x571   : > { %2119 = dma.vmem_to_hbm [thread:$0]  (%p2454_p4), %s2846_s11, 64, %s2844_s24, %s1693_s16  }
 0x572 PF: > { %p2125_p0 = scmp.ge.s32.totalorder %s2353_s18, 2  ;;  %s1719_s1 = sand.u32 1, %s2333_s13  }
 0x573   : > { %s1720_s28 = scalar_lea.sflag [#allocation3], %s1719_s1 }
 0x574   : > { %p2122_p1 = pnand %p2125_p0, %p2461_p8 }
 0x576   : > { %p2123_p2 = pneg %p2122_p1 }
 0x578   : > { %2328 = dma.done.wait (%p2123_p2), %s1720_s28, 64  }
 0x579   : > { %2330 = vsyncadd (%p2123_p2), %s1720_s28, 4294967232  ;;  %s23_s18 = sadd.s32 1, %s2353_s18   ;;  %s2909_s23 = sld [smem:[#allocation5_spill]] }
 0x57a   : > { %p20_p3 = scmp.ge.s32.totalorder %s23_s18, 4   ;;  %s2910_s13 = smov %s2337_s14 }
 0x57b   : > { %s2911_s14 = smov %s2341_s15  ;;  %s2912_s15 = smov %s2467_s26 }
 0x57c   : > { %s2913_s16 = smov %s2349_s17  ;;  %22 = sbr.rel (!%p20_p3) target bundleno = 7 (0x7), region = 107 }
 0x57f   : > { %s2914_s17 = smov %s2909_s23 }
 0x581   :  { %1725 = vsyncpa [#allocation3], 1 }
 0x582   :  { %1727 = vsyncpa [#allocation3 + $0x1], 1 }

</bundles_post_ra>
